<compile_context>
chip_gen: v7x
topology: tpu7x:2x2x1
jax: 0.10.0
libtpu: 0.0.40
codegen_flags: <defaults>
</compile_context>

<pallas_src>
import math

import jax
import jax.numpy as jnp
from jax import lax
from jax.experimental import pallas as pl
from jax.experimental.pallas import tpu as pltpu

# ---- model hyper-parameters (small, consistent with the module) ----
BATCH   = 2
SEQ     = 8
D_IN    = 16
D_OUT   = 32
N_HEADS = 4
D_HEAD  = D_OUT // N_HEADS   # 8


def _mha_flex_kernel(seq_len_ref,                       # SMEM (B,) int32  (scalar prefetch)
                     x_ref, w_in_ref, w_out_ref, b_out_ref,
                     out_ref):
    """Whole-batch fused MHA forward (single grid step).

    x_ref:     (B*S, D_IN)
    w_in_ref:  (D_IN, 3*D_OUT)   pre-transposed in_proj weight
    w_out_ref: (D_OUT, D_OUT)    pre-transposed out_proj weight
    b_out_ref: (1, D_OUT)        out_proj bias
    out_ref:   (B*S, 4*D_OUT)    lane-dense slab: [attn | q | k | v]
    """
    B, S, H, Dh = BATCH, SEQ, N_HEADS, D_HEAD
    scale = 1.0 / math.sqrt(Dh)               # flex_attention default scale

    # ---- in_proj: one (B*S, D_IN) @ (D_IN, 3*D_OUT) matmul ----
    qkv = jnp.dot(x_ref[...], w_in_ref[...],
                  preferred_element_type=jnp.float32)          # (B*S, 3*D_OUT)

    # qkv column layout is [3, H, Dh] flattened (matches qkv.view(B,S,3,H,Dh)).
    q_all = qkv[:, 0:D_OUT] * scale            # scaled copy used for scoring only
    k_all = qkv[:, D_OUT:2 * D_OUT]
    v_all = qkv[:, 2 * D_OUT:3 * D_OUT]

    # ---- mask pieces (built once, shared across heads) ----
    qi = lax.broadcasted_iota(jnp.int32, (S, S), 0)
    ki = lax.broadcasted_iota(jnp.int32, (S, S), 1)
    causal = ki <= qi                          # (S, S) bool

    # ---- per-(b,h) score matmuls; softmax batched on a stacked (B*H*S, S) slab ----
    score_tiles, bias_tiles, maskf_tiles = [], [], []
    for b in range(B):                         # B = 2, fully unrolled
        bm = jnp.logical_and(causal, ki < seq_len_ref[b])      # key padding from SMEM
        bias_b  = jnp.where(bm, 0.0, -1e30).astype(jnp.float32)
        maskf_b = bm.astype(jnp.float32)
        qb = q_all[b * S:(b + 1) * S, :]
        kb = k_all[b * S:(b + 1) * S, :]
        for h in range(H):                     # H = 4, fully unrolled
            cols = slice(h * Dh, (h + 1) * Dh)
            score_tiles.append(jnp.dot(qb[:, cols], kb[:, cols].T,
                                       preferred_element_type=jnp.float32))  # (S, S)
            bias_tiles.append(bias_b)
            maskf_tiles.append(maskf_b)

    s_stack = jnp.concatenate(score_tiles, axis=0) + jnp.concatenate(bias_tiles, axis=0)
    maskf   = jnp.concatenate(maskf_tiles, axis=0)             # (B*H*S, S)

    m     = jnp.max(s_stack, axis=-1, keepdims=True)
    p     = jnp.exp(s_stack - m) * maskf
    denom = jnp.sum(p, axis=-1, keepdims=True)
    inv   = jnp.where(denom > 0, pl.reciprocal(denom, approx=True), 0.0)
    p     = p * inv                                            # normalized probs

    # ---- per-(b,h) PV matmuls, assembled into one (B*S, D_OUT) context slab ----
    ctx_rows = []
    for b in range(B):
        vb = v_all[b * S:(b + 1) * S, :]
        head_tiles = []
        for h in range(H):
            blk = b * H + h
            ph = p[blk * S:(blk + 1) * S, :]
            head_tiles.append(jnp.dot(ph, vb[:, h * Dh:(h + 1) * Dh],
                                      preferred_element_type=jnp.float32))   # (S, Dh)
        ctx_rows.append(jnp.concatenate(head_tiles, axis=1))   # (S, D_OUT)
    ctx = jnp.concatenate(ctx_rows, axis=0)                    # (B*S, D_OUT)

    # ---- single fused out-projection + bias ----
    attn = jnp.dot(ctx, w_out_ref[...],
                   preferred_element_type=jnp.float32) + b_out_ref[...]      # (B*S, D_OUT)

    # ---- one lane-dense (B*S, 128) store: [attn | q | k | v] ----
    out_ref[...] = jnp.concatenate([attn, qkv], axis=1)


def multihead_flex_attention(x, w_in_t, w_out_t, b_out, seq_lens):
    """x: (B, S, D_IN) f32; seq_lens: (B,) int32 valid key lengths.

    Returns (attn (B,S,D_OUT), q (B,H,S,Dh), k (B,H,S,Dh))."""
    B, S, _ = x.shape
    x2 = x.reshape(B * S, D_IN)                # layout plumbing done wrapper-side

    out = pl.pallas_call(
        _mha_flex_kernel,
        out_shape=jax.ShapeDtypeStruct((B * S, 4 * D_OUT), jnp.float32),
        grid_spec=pltpu.PrefetchScalarGridSpec(
            num_scalar_prefetch=1,             # seq_lens -> SMEM
            grid=(1,),                         # whole batch in one grid step
            in_specs=[
                pl.BlockSpec((B * S, D_IN),      lambda i, sl: (0, 0)),
                pl.BlockSpec((D_IN, 3 * D_OUT),  lambda i, sl: (0, 0)),
                pl.BlockSpec((D_OUT, D_OUT),     lambda i, sl: (0, 0)),
                pl.BlockSpec((1, D_OUT),         lambda i, sl: (0, 0)),
            ],
            out_specs=pl.BlockSpec((B * S, 4 * D_OUT), lambda i, sl: (0, 0)),
        ),
        compiler_params=pltpu.CompilerParams(dimension_semantics=("arbitrary",)),
    )(seq_lens, x2, w_in_t, w_out_t, b_out)

    # Split the lane-dense slab back out (wrapper-side reshape/transpose only).
    attn = out[:, 0:D_OUT].reshape(B, S, D_OUT)
    q = out[:, D_OUT:2 * D_OUT].reshape(B, S, N_HEADS, D_HEAD).transpose(0, 2, 1, 3)
    k = out[:, 2 * D_OUT:3 * D_OUT].reshape(B, S, N_HEADS, D_HEAD).transpose(0, 2, 1, 3)
    return attn, q, k


def _reference(x, w_in_t, w_out_t, b_out, mask):
    """Pure-JAX reference of the PyTorch forward (for sanity checking)."""
    B, S, _ = x.shape
    qkv = x @ w_in_t                                            # (B, S, 3*D_OUT)
    qkv = qkv.reshape(B, S, 3, N_HEADS, D_HEAD)
    qkv = jnp.transpose(qkv, (2, 0, 3, 1, 4))                   # (3, B, H, S, Dh)
    q, k, v = qkv[0], qkv[1], qkv[2]
    s = jnp.einsum("bhqd,bhkd->bhqk", q, k) / math.sqrt(D_HEAD)
    s = jnp.where(mask[:, None, :, :] > 0, s, -1e30)
    p = jax.nn.softmax(s, axis=-1)
    p = jnp.where(mask[:, None, :, :] > 0, p, 0.0)
    ctx = jnp.einsum("bhqk,bhkd->bhqd", p, v)
    ctx = jnp.transpose(ctx, (0, 2, 1, 3)).reshape(B, S, D_OUT)
    out = ctx @ w_out_t + b_out
    return out, q, k


if __name__ == "__main__":
    jax.config.update("jax_default_matmul_precision", "highest")

    key = jax.random.PRNGKey(0)
    kx, kwin, kwout, kbout = jax.random.split(key, 4)

    # deterministic synthetic parameters (nn.Linear shapes, stored pre-transposed)
    x = jax.random.normal(kx, (BATCH, SEQ, D_IN), dtype=jnp.float32)
    w_in_t = jax.random.normal(kwin, (D_IN, 3 * D_OUT), dtype=jnp.float32) * 0.05
    w_out_t = jax.random.normal(kwout, (D_OUT, D_OUT), dtype=jnp.float32) * 0.05
    b_out = jax.random.normal(kbout, (1, D_OUT), dtype=jnp.float32) * 0.02

    # per-batch valid key lengths (the "key padding" part of the block mask)
    seq_lens = jnp.array([SEQ, 5], dtype=jnp.int32)

    attn, q, k = multihead_flex_attention(x, w_in_t, w_out_t, b_out, seq_lens)
    jax.block_until_ready((attn, q, k))

    # dense mask built host-side only for the pure-JAX reference
    qi = jnp.arange(SEQ)[:, None]
    ki = jnp.arange(SEQ)[None, :]
    causal = (ki <= qi)                                          # (S, S)
    key_pad = ki[None, :, :] < seq_lens[:, None, None]           # (B, S, S)
    mask = (causal[None, :, :] & key_pad).astype(jnp.float32)    # (B, S, S)

    ref_attn, ref_q, ref_k = _reference(x, w_in_t, w_out_t, b_out, mask)
    # attn tolerance slightly loosened: normalization uses the EUP approx reciprocal
    assert jnp.allclose(attn, ref_attn, atol=1e-3, rtol=1e-3)
    assert jnp.allclose(q, ref_q, atol=1e-4, rtol=1e-4)
    assert jnp.allclose(k, ref_k, atol=1e-4, rtol=1e-4)

    print("KERNEL_OK")
</pallas_src>

<mosaic_0001>
module attributes {stable_mosaic.version = 11 : i64} {
  func.func @_mha_flex_kernel(%arg0: i32, %arg1: memref<2xi32, #tpu.memory_space<smem>>, %arg2: memref<16x16xf32, #tpu.memory_space<vmem>>, %arg3: memref<16x96xf32, #tpu.memory_space<vmem>>, %arg4: memref<32x32xf32, #tpu.memory_space<vmem>>, %arg5: memref<1x32xf32, #tpu.memory_space<vmem>>, %arg6: memref<16x128xf32, #tpu.memory_space<vmem>>) attributes {dimension_semantics = [#tpu.dimension_semantics<arbitrary>], iteration_bounds = array<i64: 1>, scalar_prefetch = 1 : i64, scratch_operands = 0 : i64, tpu.core_type = #tpu.core_type<tc>, window_params = [{pipeline_mode = #tpu.pipeline_mode<synchronous>, transform_indices = @transform_0, window_bounds = array<i64: 16, 16>}, {pipeline_mode = #tpu.pipeline_mode<synchronous>, transform_indices = @transform_1, window_bounds = array<i64: 16, 96>}, {pipeline_mode = #tpu.pipeline_mode<synchronous>, transform_indices = @transform_2, window_bounds = array<i64: 32, 32>}, {pipeline_mode = #tpu.pipeline_mode<synchronous>, transform_indices = @transform_3, window_bounds = array<i64: 1, 32>}, {pipeline_mode = #tpu.pipeline_mode<synchronous>, transform_indices = @transform_4, window_bounds = array<i64: 16, 128>}]} {
    %c0 = arith.constant 0 : index
    %c0_0 = arith.constant 0 : index
    %0 = vector.load %arg2[%c0, %c0_0] : memref<16x16xf32, #tpu.memory_space<vmem>>, vector<16x16xf32>
    %c0_1 = arith.constant 0 : index
    %c0_2 = arith.constant 0 : index
    %1 = vector.load %arg3[%c0_1, %c0_2] : memref<16x96xf32, #tpu.memory_space<vmem>>, vector<16x96xf32>
    %cst = arith.constant dense<0.000000e+00> : vector<16x96xf32>
    %2 = tpu.matmul %0, %1, %cst {dimension_numbers = #tpu.dot_dimension_numbers<[1], [0], [0], [1], [0, 0, 1, 1], [], []>, precision = #tpu.contract_precision<fp32>} : vector<16x16xf32>, vector<16x96xf32>, vector<16x96xf32> -> vector<16x96xf32>
    %3 = vector.extract_strided_slice %2 {offsets = [0, 0], sizes = [16, 32], strides = [1, 1]} : vector<16x96xf32> to vector<16x32xf32>
    %cst_3 = arith.constant 0.353553385 : f32
    %4 = vector.broadcast %cst_3 : f32 to vector<16x32xf32>
    %5 = arith.mulf %3, %4 : vector<16x32xf32>
    %6 = vector.extract_strided_slice %2 {offsets = [0, 32], sizes = [16, 32], strides = [1, 1]} : vector<16x96xf32> to vector<16x32xf32>
    %7 = vector.extract_strided_slice %2 {offsets = [0, 64], sizes = [16, 32], strides = [1, 1]} : vector<16x96xf32> to vector<16x32xf32>
    %8 = tpu.iota {dimensions = array<i32: 0>} : vector<8x8xi32>
    %9 = tpu.iota {dimensions = array<i32: 1>} : vector<8x8xi32>
    %10 = arith.cmpi sle, %9, %8 : vector<8x8xi32>
    %c0_4 = arith.constant 0 : index
    %11 = memref.load %arg1[%c0_4] : memref<2xi32, #tpu.memory_space<smem>>
    %12 = vector.broadcast %11 : i32 to vector<8x8xi32>
    %13 = arith.cmpi slt, %9, %12 : vector<8x8xi32>
    %14 = arith.andi %10, %13 : vector<8x8xi1>
    %cst_5 = arith.constant 0.000000e+00 : f32
    %cst_6 = arith.constant -1.000000e+30 : f32
    %15 = vector.broadcast %cst_5 : f32 to vector<8x8xf32>
    %16 = vector.broadcast %cst_6 : f32 to vector<8x8xf32>
    %17 = arith.select %14, %15, %16 : vector<8x8xi1>, vector<8x8xf32>
    %18 = arith.extui %14 : vector<8x8xi1> to vector<8x8xi32>
    %19 = arith.sitofp %18 : vector<8x8xi32> to vector<8x8xf32>
    %20 = vector.extract_strided_slice %5 {offsets = [0, 0], sizes = [8, 32], strides = [1, 1]} : vector<16x32xf32> to vector<8x32xf32>
    %21 = vector.extract_strided_slice %6 {offsets = [0, 0], sizes = [8, 32], strides = [1, 1]} : vector<16x32xf32> to vector<8x32xf32>
    %22 = vector.extract_strided_slice %20 {offsets = [0, 0], sizes = [8, 8], strides = [1, 1]} : vector<8x32xf32> to vector<8x8xf32>
    %23 = vector.extract_strided_slice %21 {offsets = [0, 0], sizes = [8, 8], strides = [1, 1]} : vector<8x32xf32> to vector<8x8xf32>
    %24 = tpu.transpose %23, [1, 0] : vector<8x8xf32> -> vector<8x8xf32>
    %cst_7 = arith.constant dense<0.000000e+00> : vector<8x8xf32>
    %25 = tpu.matmul %22, %24, %cst_7 {dimension_numbers = #tpu.dot_dimension_numbers<[1], [0], [0], [1], [0, 0, 1, 1], [], []>, precision = #tpu.contract_precision<fp32>} : vector<8x8xf32>, vector<8x8xf32>, vector<8x8xf32> -> vector<8x8xf32>
    %26 = vector.extract_strided_slice %20 {offsets = [0, 8], sizes = [8, 8], strides = [1, 1]} : vector<8x32xf32> to vector<8x8xf32>
    %27 = vector.extract_strided_slice %21 {offsets = [0, 8], sizes = [8, 8], strides = [1, 1]} : vector<8x32xf32> to vector<8x8xf32>
    %28 = tpu.transpose %27, [1, 0] : vector<8x8xf32> -> vector<8x8xf32>
    %cst_8 = arith.constant dense<0.000000e+00> : vector<8x8xf32>
    %29 = tpu.matmul %26, %28, %cst_8 {dimension_numbers = #tpu.dot_dimension_numbers<[1], [0], [0], [1], [0, 0, 1, 1], [], []>, precision = #tpu.contract_precision<fp32>} : vector<8x8xf32>, vector<8x8xf32>, vector<8x8xf32> -> vector<8x8xf32>
    %30 = vector.extract_strided_slice %20 {offsets = [0, 16], sizes = [8, 8], strides = [1, 1]} : vector<8x32xf32> to vector<8x8xf32>
    %31 = vector.extract_strided_slice %21 {offsets = [0, 16], sizes = [8, 8], strides = [1, 1]} : vector<8x32xf32> to vector<8x8xf32>
    %32 = tpu.transpose %31, [1, 0] : vector<8x8xf32> -> vector<8x8xf32>
    %cst_9 = arith.constant dense<0.000000e+00> : vector<8x8xf32>
    %33 = tpu.matmul %30, %32, %cst_9 {dimension_numbers = #tpu.dot_dimension_numbers<[1], [0], [0], [1], [0, 0, 1, 1], [], []>, precision = #tpu.contract_precision<fp32>} : vector<8x8xf32>, vector<8x8xf32>, vector<8x8xf32> -> vector<8x8xf32>
    %34 = vector.extract_strided_slice %20 {offsets = [0, 24], sizes = [8, 8], strides = [1, 1]} : vector<8x32xf32> to vector<8x8xf32>
    %35 = vector.extract_strided_slice %21 {offsets = [0, 24], sizes = [8, 8], strides = [1, 1]} : vector<8x32xf32> to vector<8x8xf32>
    %36 = tpu.transpose %35, [1, 0] : vector<8x8xf32> -> vector<8x8xf32>
    %cst_10 = arith.constant dense<0.000000e+00> : vector<8x8xf32>
    %37 = tpu.matmul %34, %36, %cst_10 {dimension_numbers = #tpu.dot_dimension_numbers<[1], [0], [0], [1], [0, 0, 1, 1], [], []>, precision = #tpu.contract_precision<fp32>} : vector<8x8xf32>, vector<8x8xf32>, vector<8x8xf32> -> vector<8x8xf32>
    %c1 = arith.constant 1 : index
    %38 = memref.load %arg1[%c1] : memref<2xi32, #tpu.memory_space<smem>>
    %39 = vector.broadcast %38 : i32 to vector<8x8xi32>
    %40 = arith.cmpi slt, %9, %39 : vector<8x8xi32>
    %41 = arith.andi %10, %40 : vector<8x8xi1>
    %cst_11 = arith.constant 0.000000e+00 : f32
    %cst_12 = arith.constant -1.000000e+30 : f32
    %42 = vector.broadcast %cst_11 : f32 to vector<8x8xf32>
    %43 = vector.broadcast %cst_12 : f32 to vector<8x8xf32>
    %44 = arith.select %41, %42, %43 : vector<8x8xi1>, vector<8x8xf32>
    %45 = arith.extui %41 : vector<8x8xi1> to vector<8x8xi32>
    %46 = arith.sitofp %45 : vector<8x8xi32> to vector<8x8xf32>
    %47 = vector.extract_strided_slice %5 {offsets = [8, 0], sizes = [8, 32], strides = [1, 1]} : vector<16x32xf32> to vector<8x32xf32>
    %48 = vector.extract_strided_slice %6 {offsets = [8, 0], sizes = [8, 32], strides = [1, 1]} : vector<16x32xf32> to vector<8x32xf32>
    %49 = vector.extract_strided_slice %47 {offsets = [0, 0], sizes = [8, 8], strides = [1, 1]} : vector<8x32xf32> to vector<8x8xf32>
    %50 = vector.extract_strided_slice %48 {offsets = [0, 0], sizes = [8, 8], strides = [1, 1]} : vector<8x32xf32> to vector<8x8xf32>
    %51 = tpu.transpose %50, [1, 0] : vector<8x8xf32> -> vector<8x8xf32>
    %cst_13 = arith.constant dense<0.000000e+00> : vector<8x8xf32>
    %52 = tpu.matmul %49, %51, %cst_13 {dimension_numbers = #tpu.dot_dimension_numbers<[1], [0], [0], [1], [0, 0, 1, 1], [], []>, precision = #tpu.contract_precision<fp32>} : vector<8x8xf32>, vector<8x8xf32>, vector<8x8xf32> -> vector<8x8xf32>
    %53 = vector.extract_strided_slice %47 {offsets = [0, 8], sizes = [8, 8], strides = [1, 1]} : vector<8x32xf32> to vector<8x8xf32>
    %54 = vector.extract_strided_slice %48 {offsets = [0, 8], sizes = [8, 8], strides = [1, 1]} : vector<8x32xf32> to vector<8x8xf32>
    %55 = tpu.transpose %54, [1, 0] : vector<8x8xf32> -> vector<8x8xf32>
    %cst_14 = arith.constant dense<0.000000e+00> : vector<8x8xf32>
    %56 = tpu.matmul %53, %55, %cst_14 {dimension_numbers = #tpu.dot_dimension_numbers<[1], [0], [0], [1], [0, 0, 1, 1], [], []>, precision = #tpu.contract_precision<fp32>} : vector<8x8xf32>, vector<8x8xf32>, vector<8x8xf32> -> vector<8x8xf32>
    %57 = vector.extract_strided_slice %47 {offsets = [0, 16], sizes = [8, 8], strides = [1, 1]} : vector<8x32xf32> to vector<8x8xf32>
    %58 = vector.extract_strided_slice %48 {offsets = [0, 16], sizes = [8, 8], strides = [1, 1]} : vector<8x32xf32> to vector<8x8xf32>
    %59 = tpu.transpose %58, [1, 0] : vector<8x8xf32> -> vector<8x8xf32>
    %cst_15 = arith.constant dense<0.000000e+00> : vector<8x8xf32>
    %60 = tpu.matmul %57, %59, %cst_15 {dimension_numbers = #tpu.dot_dimension_numbers<[1], [0], [0], [1], [0, 0, 1, 1], [], []>, precision = #tpu.contract_precision<fp32>} : vector<8x8xf32>, vector<8x8xf32>, vector<8x8xf32> -> vector<8x8xf32>
    %61 = vector.extract_strided_slice %47 {offsets = [0, 24], sizes = [8, 8], strides = [1, 1]} : vector<8x32xf32> to vector<8x8xf32>
    %62 = vector.extract_strided_slice %48 {offsets = [0, 24], sizes = [8, 8], strides = [1, 1]} : vector<8x32xf32> to vector<8x8xf32>
    %63 = tpu.transpose %62, [1, 0] : vector<8x8xf32> -> vector<8x8xf32>
    %cst_16 = arith.constant dense<0.000000e+00> : vector<8x8xf32>
    %64 = tpu.matmul %61, %63, %cst_16 {dimension_numbers = #tpu.dot_dimension_numbers<[1], [0], [0], [1], [0, 0, 1, 1], [], []>, precision = #tpu.contract_precision<fp32>} : vector<8x8xf32>, vector<8x8xf32>, vector<8x8xf32> -> vector<8x8xf32>
    %65 = tpu.concatenate %25, %29, %33, %37, %52, %56, %60, %64 in 0 : vector<8x8xf32>, vector<8x8xf32>, vector<8x8xf32>, vector<8x8xf32>, vector<8x8xf32>, vector<8x8xf32>, vector<8x8xf32>, vector<8x8xf32> -> vector<64x8xf32>
    %66 = tpu.concatenate %17, %17, %17, %17, %44, %44, %44, %44 in 0 : vector<8x8xf32>, vector<8x8xf32>, vector<8x8xf32>, vector<8x8xf32>, vector<8x8xf32>, vector<8x8xf32>, vector<8x8xf32>, vector<8x8xf32> -> vector<64x8xf32>
    %67 = arith.addf %65, %66 : vector<64x8xf32>
    %68 = tpu.concatenate %19, %19, %19, %19, %46, %46, %46, %46 in 0 : vector<8x8xf32>, vector<8x8xf32>, vector<8x8xf32>, vector<8x8xf32>, vector<8x8xf32>, vector<8x8xf32>, vector<8x8xf32>, vector<8x8xf32> -> vector<64x8xf32>
    %cst_17 = arith.constant dense<0xFF800000> : vector<64xf32>
    %69 = vector.multi_reduction <maximumf>, %67, %cst_17 [1] : vector<64x8xf32> to vector<64xf32>
    %70 = vector.shape_cast %69 : vector<64xf32> to vector<64x1xf32>
    %71 = vector.broadcast %70 : vector<64x1xf32> to vector<64x8xf32>
    %72 = arith.subf %67, %71 : vector<64x8xf32>
    %73 = math.exp %72 : vector<64x8xf32>
    %74 = arith.mulf %73, %68 : vector<64x8xf32>
    %cst_18 = arith.constant dense<0.000000e+00> : vector<64xf32>
    %75 = vector.multi_reduction <add>, %74, %cst_18 [1] : vector<64x8xf32> to vector<64xf32>
    %76 = vector.shape_cast %75 : vector<64xf32> to vector<64x1xf32>
    %cst_19 = arith.constant 0.000000e+00 : f32
    %77 = vector.broadcast %cst_19 : f32 to vector<64x1xf32>
    %78 = arith.cmpf ogt, %76, %77 : vector<64x1xf32>
    %79 = tpu.reciprocal %76 {approx = true} : vector<64x1xf32> -> vector<64x1xf32>
    %cst_20 = arith.constant 0.000000e+00 : f32
    %80 = vector.broadcast %cst_20 : f32 to vector<64x1xf32>
    %81 = arith.select %78, %79, %80 : vector<64x1xi1>, vector<64x1xf32>
    %82 = vector.broadcast %81 : vector<64x1xf32> to vector<64x8xf32>
    %83 = arith.mulf %74, %82 : vector<64x8xf32>
    %84 = vector.extract_strided_slice %7 {offsets = [0, 0], sizes = [8, 32], strides = [1, 1]} : vector<16x32xf32> to vector<8x32xf32>
    %85 = vector.extract_strided_slice %83 {offsets = [0, 0], sizes = [8, 8], strides = [1, 1]} : vector<64x8xf32> to vector<8x8xf32>
    %86 = vector.extract_strided_slice %84 {offsets = [0, 0], sizes = [8, 8], strides = [1, 1]} : vector<8x32xf32> to vector<8x8xf32>
    %cst_21 = arith.constant dense<0.000000e+00> : vector<8x8xf32>
    %87 = tpu.matmul %85, %86, %cst_21 {dimension_numbers = #tpu.dot_dimension_numbers<[1], [0], [0], [1], [0, 0, 1, 1], [], []>, precision = #tpu.contract_precision<fp32>} : vector<8x8xf32>, vector<8x8xf32>, vector<8x8xf32> -> vector<8x8xf32>
    %88 = vector.extract_strided_slice %83 {offsets = [8, 0], sizes = [8, 8], strides = [1, 1]} : vector<64x8xf32> to vector<8x8xf32>
    %89 = vector.extract_strided_slice %84 {offsets = [0, 8], sizes = [8, 8], strides = [1, 1]} : vector<8x32xf32> to vector<8x8xf32>
    %cst_22 = arith.constant dense<0.000000e+00> : vector<8x8xf32>
    %90 = tpu.matmul %88, %89, %cst_22 {dimension_numbers = #tpu.dot_dimension_numbers<[1], [0], [0], [1], [0, 0, 1, 1], [], []>, precision = #tpu.contract_precision<fp32>} : vector<8x8xf32>, vector<8x8xf32>, vector<8x8xf32> -> vector<8x8xf32>
    %91 = vector.extract_strided_slice %83 {offsets = [16, 0], sizes = [8, 8], strides = [1, 1]} : vector<64x8xf32> to vector<8x8xf32>
    %92 = vector.extract_strided_slice %84 {offsets = [0, 16], sizes = [8, 8], strides = [1, 1]} : vector<8x32xf32> to vector<8x8xf32>
    %cst_23 = arith.constant dense<0.000000e+00> : vector<8x8xf32>
    %93 = tpu.matmul %91, %92, %cst_23 {dimension_numbers = #tpu.dot_dimension_numbers<[1], [0], [0], [1], [0, 0, 1, 1], [], []>, precision = #tpu.contract_precision<fp32>} : vector<8x8xf32>, vector<8x8xf32>, vector<8x8xf32> -> vector<8x8xf32>
    %94 = vector.extract_strided_slice %83 {offsets = [24, 0], sizes = [8, 8], strides = [1, 1]} : vector<64x8xf32> to vector<8x8xf32>
    %95 = vector.extract_strided_slice %84 {offsets = [0, 24], sizes = [8, 8], strides = [1, 1]} : vector<8x32xf32> to vector<8x8xf32>
    %cst_24 = arith.constant dense<0.000000e+00> : vector<8x8xf32>
    %96 = tpu.matmul %94, %95, %cst_24 {dimension_numbers = #tpu.dot_dimension_numbers<[1], [0], [0], [1], [0, 0, 1, 1], [], []>, precision = #tpu.contract_precision<fp32>} : vector<8x8xf32>, vector<8x8xf32>, vector<8x8xf32> -> vector<8x8xf32>
    %97 = tpu.concatenate %87, %90, %93, %96 in 1 : vector<8x8xf32>, vector<8x8xf32>, vector<8x8xf32>, vector<8x8xf32> -> vector<8x32xf32>
    %98 = vector.extract_strided_slice %7 {offsets = [8, 0], sizes = [8, 32], strides = [1, 1]} : vector<16x32xf32> to vector<8x32xf32>
    %99 = vector.extract_strided_slice %83 {offsets = [32, 0], sizes = [8, 8], strides = [1, 1]} : vector<64x8xf32> to vector<8x8xf32>
    %100 = vector.extract_strided_slice %98 {offsets = [0, 0], sizes = [8, 8], strides = [1, 1]} : vector<8x32xf32> to vector<8x8xf32>
    %cst_25 = arith.constant dense<0.000000e+00> : vector<8x8xf32>
    %101 = tpu.matmul %99, %100, %cst_25 {dimension_numbers = #tpu.dot_dimension_numbers<[1], [0], [0], [1], [0, 0, 1, 1], [], []>, precision = #tpu.contract_precision<fp32>} : vector<8x8xf32>, vector<8x8xf32>, vector<8x8xf32> -> vector<8x8xf32>
    %102 = vector.extract_strided_slice %83 {offsets = [40, 0], sizes = [8, 8], strides = [1, 1]} : vector<64x8xf32> to vector<8x8xf32>
    %103 = vector.extract_strided_slice %98 {offsets = [0, 8], sizes = [8, 8], strides = [1, 1]} : vector<8x32xf32> to vector<8x8xf32>
    %cst_26 = arith.constant dense<0.000000e+00> : vector<8x8xf32>
    %104 = tpu.matmul %102, %103, %cst_26 {dimension_numbers = #tpu.dot_dimension_numbers<[1], [0], [0], [1], [0, 0, 1, 1], [], []>, precision = #tpu.contract_precision<fp32>} : vector<8x8xf32>, vector<8x8xf32>, vector<8x8xf32> -> vector<8x8xf32>
    %105 = vector.extract_strided_slice %83 {offsets = [48, 0], sizes = [8, 8], strides = [1, 1]} : vector<64x8xf32> to vector<8x8xf32>
    %106 = vector.extract_strided_slice %98 {offsets = [0, 16], sizes = [8, 8], strides = [1, 1]} : vector<8x32xf32> to vector<8x8xf32>
    %cst_27 = arith.constant dense<0.000000e+00> : vector<8x8xf32>
    %107 = tpu.matmul %105, %106, %cst_27 {dimension_numbers = #tpu.dot_dimension_numbers<[1], [0], [0], [1], [0, 0, 1, 1], [], []>, precision = #tpu.contract_precision<fp32>} : vector<8x8xf32>, vector<8x8xf32>, vector<8x8xf32> -> vector<8x8xf32>
    %108 = vector.extract_strided_slice %83 {offsets = [56, 0], sizes = [8, 8], strides = [1, 1]} : vector<64x8xf32> to vector<8x8xf32>
    %109 = vector.extract_strided_slice %98 {offsets = [0, 24], sizes = [8, 8], strides = [1, 1]} : vector<8x32xf32> to vector<8x8xf32>
    %cst_28 = arith.constant dense<0.000000e+00> : vector<8x8xf32>
    %110 = tpu.matmul %108, %109, %cst_28 {dimension_numbers = #tpu.dot_dimension_numbers<[1], [0], [0], [1], [0, 0, 1, 1], [], []>, precision = #tpu.contract_precision<fp32>} : vector<8x8xf32>, vector<8x8xf32>, vector<8x8xf32> -> vector<8x8xf32>
    %111 = tpu.concatenate %101, %104, %107, %110 in 1 : vector<8x8xf32>, vector<8x8xf32>, vector<8x8xf32>, vector<8x8xf32> -> vector<8x32xf32>
    %112 = tpu.concatenate %97, %111 in 0 : vector<8x32xf32>, vector<8x32xf32> -> vector<16x32xf32>
    %c0_29 = arith.constant 0 : index
    %c0_30 = arith.constant 0 : index
    %113 = vector.load %arg4[%c0_29, %c0_30] : memref<32x32xf32, #tpu.memory_space<vmem>>, vector<32x32xf32>
    %cst_31 = arith.constant dense<0.000000e+00> : vector<16x32xf32>
    %114 = tpu.matmul %112, %113, %cst_31 {dimension_numbers = #tpu.dot_dimension_numbers<[1], [0], [0], [1], [0, 0, 1, 1], [], []>, precision = #tpu.contract_precision<fp32>} : vector<16x32xf32>, vector<32x32xf32>, vector<16x32xf32> -> vector<16x32xf32>
    %c0_32 = arith.constant 0 : index
    %c0_33 = arith.constant 0 : index
    %115 = vector.load %arg5[%c0_32, %c0_33] : memref<1x32xf32, #tpu.memory_space<vmem>>, vector<1x32xf32>
    %116 = vector.broadcast %115 : vector<1x32xf32> to vector<16x32xf32>
    %117 = arith.addf %114, %116 : vector<16x32xf32>
    %118 = tpu.concatenate %117, %2 in 1 : vector<16x32xf32>, vector<16x96xf32> -> vector<16x128xf32>
    %c0_34 = arith.constant 0 : index
    %c0_35 = arith.constant 0 : index
    %119 = vector.load %arg6[%c0_34, %c0_35] : memref<16x128xf32, #tpu.memory_space<vmem>>, vector<16x128xf32>
    tpu.vector_store %arg6[%c0_34, %c0_35], %118 {strides = array<i32>} : memref<16x128xf32, #tpu.memory_space<vmem>>, vector<16x128xf32>,
    return
  }
  func.func @transform_0(%arg0: i32, %arg1: memref<2xi32, #tpu.memory_space<smem>>) -> (i32, i32) {
    %c0_i32 = arith.constant 0 : i32
    %c0_i32_0 = arith.constant 0 : i32
    %c0_i32_1 = arith.constant 0 : i32
    return %c0_i32, %c0_i32_0 : i32, i32
  }
  func.func @transform_1(%arg0: i32, %arg1: memref<2xi32, #tpu.memory_space<smem>>) -> (i32, i32) {
    %c0_i32 = arith.constant 0 : i32
    %c0_i32_0 = arith.constant 0 : i32
    %c0_i32_1 = arith.constant 0 : i32
    return %c0_i32, %c0_i32_0 : i32, i32
  }
  func.func @transform_2(%arg0: i32, %arg1: memref<2xi32, #tpu.memory_space<smem>>) -> (i32, i32) {
    %c0_i32 = arith.constant 0 : i32
    %c0_i32_0 = arith.constant 0 : i32
    %c0_i32_1 = arith.constant 0 : i32
    return %c0_i32, %c0_i32_0 : i32, i32
  }
  func.func @transform_3(%arg0: i32, %arg1: memref<2xi32, #tpu.memory_space<smem>>) -> (i32, i32) {
    %c0_i32 = arith.constant 0 : i32
    %c0_i32_0 = arith.constant 0 : i32
    %c0_i32_1 = arith.constant 0 : i32
    return %c0_i32, %c0_i32_0 : i32, i32
  }
  func.func @transform_4(%arg0: i32, %arg1: memref<2xi32, #tpu.memory_space<smem>>) -> (i32, i32) {
    %c0_i32 = arith.constant 0 : i32
    %c0_i32_0 = arith.constant 0 : i32
    %c0_i32_1 = arith.constant 0 : i32
    return %c0_i32, %c0_i32_0 : i32, i32
  }
}

</mosaic_0001>

<bundles_post_ra>
// kernel: tpu_custom_call.1
= control target key start
LH: loop header
LB: loop body
LE: loop exit
PB: predicated region body
PF: predicated region fallthrough
CT: control target
= control target key end

     0   :  { %s10636_s0 = inlined_call_operand.hbm [shape: s32[2], index: 0, kind: input, shape index: {}]   ;;  %s10637_s1 = inlined_call_operand.hbm [shape: f32[16,16], index: 1, kind: input, shape index: {}]   ;;  %s10638_s2 = inlined_call_operand.hbm [shape: f32[16,96], index: 2, kind: input, shape index: {}]   ;;  %s10639_s3 = inlined_call_operand.hbm [shape: f32[32,32], index: 3, kind: input, shape index: {}]   ;;  %s10640_s4 = inlined_call_operand.vmem [shape: f32[1,32], index: 4, kind: input, shape index: {}]   ;;  %s10641_s5 = inlined_call_operand.hbm [shape: f32[16,128], index: 5, kind: output, shape index: {}]  }
   0x1   :  { %s9646_s20 = scalar_lea.hbm %s10636_s0, 16 }
   0x2   :  { %p9647_p0 = scmp.ne.s32.totalorder %s10636_s0, %s9646_s20  ;;  %p9650_p1 = scmp.lt.u32.totalorder %s9646_s20, %s10636_s0 }
   0x4   :  { %p9652_p2 = pnand %p9650_p1, %p9647_p0 }
   0x6   :  { %9655 = shalt.err (!%p9652_p2)  }
   0x7   :  { %s9752_s25 = smov [#allocation3]  }
   0x8   :  { %11 = dma.hbm_to_smem %s10636_s0, 16, %s9752_s25, [#allocation2] }
   0x9   :  { %9744 = dma.done.wait [#allocation2], 16 }
   0xa   :  { %9745 = vsyncadd [#allocation2], 4294967280 }
   0xb   :  { %13 = sfence }
   0xc   :  { %14 = vsyncpa [#allocation5], 0 }
   0xd   :  { %15 = vsyncpa [#allocation8], 0 }
   0xe   :  { %16 = vsyncpa [#allocation6], 0  ;;  %s9753_s28 = smov [#allocation7]   ;;  %s9754_s30 = smov [#allocation4]  }
   0xf   :  { %s34_s29 = sshll.u32 %s9753_s28, 4  ;;  %s22_s6 = sshll.u32 %s9754_s30, 4  ;;  %s35_s29 = int_to_ptr.vmem [resolvable:$true] %s34_s29  ;;  %s9818_s6 = int_to_ptr.vmem [resolvable:$true] %s22_s6 }
  0x10   :  { %s9656_s9 = scalar_lea.hbm %s10638_s2, 256 }
  0x11   :  { %p9657_p3 = scmp.ne.s32.totalorder %s10638_s2, %s9656_s9  ;;  %p9660_p4 = scmp.lt.u32.totalorder %s9656_s9, %s10638_s2 }
  0x13   :  { %p9662_p5 = pnand %p9660_p4, %p9657_p3 }
  0x15   :  { %9665 = shalt.err (!%p9662_p5)
}
  0x16   :  { %s9666_s13 = scalar_lea.vmem %s35_s29, 256  ;;  %p9671_p7 = scmp.lt.s32.totalorder %s35_s29, %s35_s29 }
  0x17   :  { %p9667_p6 = scmp.ne.s32.totalorder %s35_s29, %s9666_s13  ;;  %p9672_p8 = scmp.lt.s32.totalorder %s9666_s13, %s9666_s13 }
  0x19   :  { %p9673_p9 = por %p9672_p8, %p9671_p7 }
  0x1b   :  { %p9674_p10 = pnand %p9673_p9, %p9667_p6 }
  0x1d   :  { %9677 = shalt.err (!%p9674_p10)
}
  0x1e   :  { %s9755_s14 = smov 128   ;;  %s9756_s15 = smov 8  }
  0x1f   :  { %40 = dma.hbm_to_vmem [thread:$0]  %s10638_s2, 256, %s35_s29, [#allocation8], %s9755_s14, %s9755_s14, %s9756_s15  }
  0x20   :  { %s9678_s20 = scalar_lea.hbm %s10637_s1, 256 }
  0x21   :  { %p9679_p11 = scmp.ne.s32.totalorder %s10637_s1, %s9678_s20  ;;  %p9682_p12 = scmp.lt.u32.totalorder %s9678_s20, %s10637_s1 }
  0x23   :  { %p9684_p13 = pnand %p9682_p12, %p9679_p11 }
  0x25   :  { %9687 = shalt.err (!%p9684_p13)
}
  0x26   :  { %s9688_s25 = scalar_lea.vmem %s9818_s6, 256  ;;  %p9693_p1 = scmp.lt.s32.totalorder %s9818_s6, %s9818_s6 }
  0x27   :  { %p9689_p0 = scmp.ne.s32.totalorder %s9818_s6, %s9688_s25  ;;  %p9694_p2 = scmp.lt.s32.totalorder %s9688_s25, %s9688_s25 }
  0x29   :  { %p9695_p3 = por %p9694_p2, %p9693_p1 }
  0x2b   :  { %p9696_p4 = pnand %p9695_p3, %p9689_p0 }
  0x2d   :  { %9699 = shalt.err (!%p9696_p4)
}
  0x2e   :  { %28 = dma.hbm_to_vmem [thread:$0]  %s10637_s1, 256, %s9818_s6, [#allocation5], %s9755_s14, %s9755_s14, %s9756_s15  }
  0x2f   :  { %s9757_s27 = smov [#allocation9]   ;;  %s9700_s7 = scalar_lea.hbm %s10639_s3, 512 }
  0x30   :  { %s46_s28 = sshll.u32 %s9757_s27, 4  ;;  %p9701_p5 = scmp.ne.s32.totalorder %s10639_s3, %s9700_s7  ;;  %s47_s28 = int_to_ptr.vmem [resolvable:$true] %s46_s28 }
  0x31   :  { %p9704_p6 = scmp.lt.u32.totalorder %s9700_s7, %s10639_s3 }
  0x33   :  { %p9706_p7 = pnand %p9704_p6, %p9701_p5 }
  0x35   :  { %9709 = shalt.err (!%p9706_p7)
}
  0x36   :  { %s9710_s0 = scalar_lea.vmem %s47_s28, 512  ;;  %p9715_p9 = scmp.lt.s32.totalorder %s47_s28, %s47_s28 }
  0x37   :  { %p9711_p8 = scmp.ne.s32.totalorder %s47_s28, %s9710_s0  ;;  %p9716_p10 = scmp.lt.s32.totalorder %s9710_s0, %s9710_s0 }
  0x39   :  { %p9717_p11 = por %p9716_p10, %p9715_p9 }
  0x3b   :  { %p9718_p12 = pnand %p9717_p11, %p9711_p8 }
  0x3d   :  { %9721 = shalt.err (!%p9718_p12)
}
  0x3e   :  { %52 = dma.hbm_to_vmem [thread:$0]  %s10639_s3, 512, %s47_s28, [#allocation8], %s9755_s14, %s9755_s14, %s9756_s15  }
  0x3f   :  { %9746 = dma.done.wait [#allocation5], 256  }
  0x40   :  { %9747 = vsyncadd [#allocation5], 4294967040 }
  0x41   :  { %9748 = dma.done.wait [#allocation8], 768  }
  0x42   :  { %9749 = vsyncadd [#allocation8], 4294966528  ;;  %vm68_vm0 = vcmask 130048   ;;  %v66_v0 = vld [vmem:[#allocation7] sm:$0xff]  ;;  %v67_v1 = vld [vmem:[#allocation7 + $0x8] sm:$0xff]  ;;  %v9758_v30 = vmov 0.0  }
  0x43   :  { %v64_v2 = vld [vmem:[#allocation4] sm:$0xff]  ;;  %v76_v3 = vand.u32 4294901760, %v66_v0  ;;  %v79_v4 = vand.u32 4294901760, %v67_v1  ;;  %v65_v6 = vld [vmem:[#allocation4 + $0x8] sm:$0xff]  ;;  %8870 = vmatprep.subr.mxu1 %v9758_v30  ;;  %vm9759_vm1 = vmmov 0   ;;  %s9760_s3 = smov 96  }
  0x44   :  { %v70_v5 = vsel %vm68_vm0, %v64_v2, 0  ;;  %v73_v8 = vsel %vm68_vm0, %v65_v6, 0  ;;  %8872 = vmatprep.mubr.msk.f32.mxu1 %vm9759_vm1, %v9758_v30  ;;  %s9761_s12 = smov 120   ;;  %s9762_s13 = smov 88   ;;  %vm594_vm2 = vcmask 64512  }
  0x45   :  { %v142_v7 = vand.u32 4294901760, %v70_v5  ;;  %v9416_v9 = vpack.c.bf16 %v79_v4, %v76_v3  ;;  %v152_v10 = vand.u32 4294901760, %v73_v8  ;;  %v164_v11 = vsub.f32 %v66_v0, %v76_v3  ;;  %s9763_s16 = smov 80   ;;  %s9764_s17 = smov 112  }
  0x46   :  { %v171_v12 = vsub.f32 %v67_v1, %v79_v4  ;;  %s9765_s18 = smov 72   ;;  %s9766_s19 = smov 104  }
  0x47   :  { %v143_v13 = vsub.f32 %v70_v5, %v142_v7  ;;  %9417 = vmatprep.subr.bf16.mxu0 %v9416_v9  ;;  %v153_v14 = vsub.f32 %v73_v8, %v152_v10  ;;  %v165_v15 = vand.u32 4294901760, %v164_v11  ;;  %s584_s20 = sld [smem:[#allocation3]]  ;;  %s8573_s21 = sld [smem:[#allocation3 + $0x1]] }
  0x48   :  { %v172_v16 = vand.u32 4294901760, %v171_v12  ;;  %9419 = vmatpush3.bf16.msra.mxu0 %v9416_v9  ;;  %v9424_v28 = vpack.c.bf16 %v171_v12, %v164_v11  ;;  %s9768_s22 = smov 64   ;;  %s9769_s23 = smov 56  }
  0x49   :  { %v144_v17 = vand.u32 4294901760, %v143_v13  ;;  %v154_v18 = vand.u32 4294901760, %v153_v14  ;;  %v166_v19 = vsub.f32 %v164_v11, %v165_v15  ;;  %s9770_s24 = smov 48   ;;  %s9771_s25 = smov 40  }
  0x4a   :  { %v173_v20 = vsub.f32 %v171_v12, %v172_v16  ;;  %v9432_v29 = vpack.c.bf16 %v172_v16, %v165_v15  ;;  %s9772_s2 = smov 16   ;;  %s9773_s26 = smov 24  }
  0x4b   :  { %v145_v21 = vsub.f32 %v143_v13, %v144_v17  ;;  %v155_v22 = vsub.f32 %v153_v14, %v154_v18  ;;  %v167_v23 = vand.u32 4294901760, %v166_v19  ;;  %s9774_s27 = smov 32   ;;  %s9775_s30 = smov [#allocation10]  }
  0x4c   :  { %v174_v24 = vand.u32 4294901760, %v173_v20  ;;  %s8559_s7 = sshll.u32 %s9775_s30, 4  ;;  %s8560_s7 = int_to_ptr.vmem [resolvable:$true] %s8559_s7 }
  0x4d   :  { %v146_v25 = vand.u32 4294901760, %v145_v21  ;;  %v156_v26 = vand.u32 4294901760, %v155_v22  ;;  %s9722_s8 = scalar_lea.vmem %s8560_s7, 256  ;;  %p9727_p0 = scmp.lt.s32.totalorder %s8560_s7, %s8560_s7 }
  0x4e   :  { %v9420_v27 = vpack.c.bf16 %v174_v24, %v167_v23  ;;  %p9723_p13 = scmp.ne.s32.totalorder %s8560_s7, %s9722_s8  ;;  %p9728_p1 = scmp.lt.s32.totalorder %s9722_s8, %s9722_s8 }
  0x4f   :  { %8832 = vmatprep.mubr.f32.mxu0 %v146_v25 }
  0x50   :  { %8833 = vmatmul.mubr.f32.vlgmr.msra.gmra.mrb[0].mxu0 %v156_v26  ;;  %9421 = vmatprep.subr.bf16.mxu0 %v9420_v27  ;;  %p9729_p2 = por %p9728_p1, %p9727_p0 }
  0x51   :  { %9423 = vmatpush3.bf16.msra.mxu0 %v9420_v27  ;;  %8839 = vmatprep.mubr.f32.mxu0 %v142_v7 }
  0x52   :  { %9425 = vmatprep.subr.bf16.mxu0 %v9424_v28  ;;  %p9730_p3 = pnand %p9729_p2, %p9723_p13 }
  0x58   :  { %8840 = vmatmul.mubr.f32.vlgmr.msra.gmra.mrb[0].mxu0 %v152_v10 }
  0x59   :  { %9427 = vmatpush3.bf16.msra.mxu0 %v9424_v28  ;;  %8846 = vmatprep.mubr.f32.mxu0 %v143_v13 }
  0x5a   :  { %9429 = vmatprep.subr.bf16.mxu0 %v9416_v9 }
  0x60   :  { %8847 = vmatmul.mubr.f32.vlgmr.msra.gmra.mrb[0].mxu0 %v153_v14 }
  0x61   :  { %9431 = vmatpush3.bf16.msra.mxu0 %v9416_v9  ;;  %8853 = vmatprep.mubr.f32.mxu0 %v144_v17 }
  0x62   :  { %9433 = vmatprep.subr.bf16.mxu0 %v9432_v29 }
  0x68   :  { %8854 = vmatmul.mubr.f32.vlgmr.msra.gmra.mrb[0].mxu0 %v154_v18 }
  0x69   :  { %9435 = vmatpush3.bf16.msra.mxu0 %v9432_v29  ;;  %8860 = vmatprep.mubr.f32.mxu0 %v142_v7 }
  0x6a   :  { %9437 = vmatprep.subr.bf16.mxu0 %v9416_v9 }
  0x70   :  { %8861 = vmatmul.mubr.f32.vlgmr.msra.gmra.mrb[0].mxu0 %v152_v10 }
  0x71   :  { %9439 = vmatpush3.bf16.msra.mxu0 %v9416_v9  ;;  %8867 = vmatprep.mubr.f32.mxu0 %v142_v7 }
  0x72   :  { %8900 = vmatprep.subr.mxu0 %v9758_v30 }
  0x78   :  { %8868 = vmatmul.mubr.f32.vlgmr.msra.gmra.mrb[0].mxu0 %v152_v10 }
  0x79   :  { %8902 = vmatprep.mubr.msk.f32.mxu0 %vm9759_vm1, %v9758_v30 }
 0x14b   :  { %v9878_v31 = vpop.f32.mrb[0].mxu0 }
 0x14c   :  { %v9880_v32 = vpop.f32.mrb[1].mxu0  ;;  %v9890_v34 = vmul.f32 0.35355338, %v9878_v31 }
 0x14d   :  { %592 = vrot.lane.b32.xlu0 %v9880_v32, %s9760_s3  ;;  %v577_v33 = vmul.f32 0.35355338, %v9880_v32 }
 0x14e   :  { %v2419_v15 = vsel %vm594_vm2, %v9890_v34, 0 }
 0x14f   :  { %1046 = vrot.lane.b32.xlu1 %v577_v33, %s9761_s12  ;;  %v596_v35 = vsel %vm594_vm2, %v577_v33, 0  ;;  %v9988_v20 = vand.u32 4294901760, %v2419_v15 }
 0x150   :  { %v9898_v36 = vand.u32 4294901760, %v596_v35 }
 0x151   :  { %1048 = vrot.lane.b32.xlu0 %v9880_v32, %s9762_s13  ;;  %v10003_v23 = vsub.f32 %v2419_v15, %v9988_v20 }
 0x152   :  { %v667_v37 = vsub.f32 %v596_v35, %v9898_v36 }
 0x153   :  { %1502 = vrot.lane.b32.xlu1 %v9880_v32, %s9763_s16  ;;  %v2491_v27 = vand.u32 4294901760, %v10003_v23 }
 0x154   :  { %v668_v38 = vand.u32 4294901760, %v667_v37 }
 0x155   :  { %1500 = vrot.lane.b32.xlu0 %v577_v33, %s9764_s17 }
 0x156   :  { %v669_v41 = vsub.f32 %v667_v37, %v668_v38 }
 0x157   :  { %1956 = vrot.lane.b32.xlu1 %v9880_v32, %s9765_s18 }
 0x158   :  { %v670_v49 = vand.u32 4294901760, %v669_v41 }
 0x159   :  { %1954 = vrot.lane.b32.xlu0 %v577_v33, %s9766_s19 }
 0x15b   :  { %2416 = vrot.lane.b32.xlu1 %v9878_v31, %s9760_s3 }
 0x15d   :  { %2871 = vrot.lane.b32.xlu0 %v9878_v31, %s9762_s13 }
 0x15f   :  { %2869 = vrot.lane.b32.xlu1 %v9890_v34, %s9761_s12 }
 0x161   :  { %3325 = vrot.lane.b32.xlu0 %v9878_v31, %s9763_s16 }
 0x163   :  { %3323 = vrot.lane.b32.xlu1 %v9890_v34, %s9764_s17 }
 0x165   :  { %3779 = vrot.lane.b32.xlu0 %v9878_v31, %s9765_s18 }
 0x167   :  { %3777 = vrot.lane.b32.xlu1 %v9890_v34, %s9766_s19 }
 0x1bf   :  { %v593_v39 = vpop.permute.xlu0 %592 }
 0x1c0   :  { %v598_v40 = vsel %vm594_vm2, %v593_v39, 0 }
 0x1c1   :  { %v9902_v42 = vand.u32 4294901760, %v598_v40  ;;  %v1047_v43 = vpop.permute.xlu1 %1046 }
 0x1c2   :  { %v1050_v44 = vsel %vm594_vm2, %v1047_v43, 0 }
 0x1c3   :  { %v678_v45 = vsub.f32 %v598_v40, %v9902_v42  ;;  %v9906_v46 = vand.u32 4294901760, %v1050_v44  ;;  %8871 = vmatpush3.xpose.msra.mxu1 %v9902_v42  ;;  %v1049_v47 = vpop.permute.xlu0 %1048 }
 0x1c4   :  { %v1052_v48 = vsel %vm594_vm2, %v1049_v47, 0  ;;  %8875 = vmatprep.subr.mxu1 %v9758_v30 }
 0x1c5   :  { %v679_v50 = vand.u32 4294901760, %v678_v45  ;;  %v9912_v51 = vsub.f32 %v1050_v44, %v9906_v46  ;;  %v9914_v52 = vand.u32 4294901760, %v1052_v48  ;;  %v1503_v0 = vpop.permute.xlu1 %1502 }
 0x1c6   :  { %8873 = vmatmul.mubr.f32.vlgmr.msra.gmra.mrb[0].mxu1 %v670_v49  ;;  %v1506_v4 = vsel %vm594_vm2, %v1503_v0, 0 }
 0x1c7   :  { %v680_v53 = vsub.f32 %v678_v45, %v679_v50  ;;  %v1122_v54 = vand.u32 4294901760, %v9912_v51  ;;  %8901 = vmatpush3.xpose.msra.mxu0 %v9914_v52  ;;  %v1501_v55 = vpop.permute.xlu0 %1500  ;;  %8877 = vmatprep.mubr.msk.f32.mxu1 %vm9759_vm1, %v9758_v30  ;;  %v1132_v61 = vsub.f32 %v1052_v48, %v9914_v52  ;;  %v9951_v7 = vand.u32 4294901760, %v1506_v4 }
 0x1c8   :  { %v1504_v56 = vsel %vm594_vm2, %v1501_v55, 0  ;;  %8910 = vmatprep.subr.mxu0 %v9758_v30 }
 0x1c9   :  { %v681_v57 = vand.u32 4294901760, %v680_v53  ;;  %v1123_v58 = vsub.f32 %v9912_v51, %v1122_v54  ;;  %v9925_v59 = vand.u32 4294901760, %v1504_v56  ;;  %v1133_v2 = vand.u32 4294901760, %v1132_v61  ;;  %v1957_v12 = vpop.permute.xlu1 %1956 }
 0x1ca   :  { %v1586_v10 = vsub.f32 %v1506_v4, %v9951_v7  ;;  %v1960_v17 = vsel %vm594_vm2, %v1957_v12, 0 }
 0x1cb   :  { %v1124_v60 = vand.u32 4294901760, %v1123_v58  ;;  %8876 = vmatpush3.xpose.msra.mxu1 %v681_v57  ;;  %v9929_v62 = vsub.f32 %v1504_v56, %v9925_v59  ;;  %v1955_v63 = vpop.permute.xlu0 %1954  ;;  %v1134_v11 = vsub.f32 %v1132_v61, %v1133_v2  ;;  %v9990_v21 = vand.u32 4294901760, %v1960_v17 }
 0x1cc   :  { %8880 = vmatprep.subr.mxu1 %v9758_v30  ;;  %v1958_v3 = vsel %vm594_vm2, %v1955_v63, 0  ;;  %v1587_v14 = vand.u32 4294901760, %v1586_v10 }
 0x1cd   :  { %8903 = vmatmul.mubr.f32.vlgmr.msra.gmra.mrb[2].mxu0 %v1124_v60  ;;  %v1576_v1 = vand.u32 4294901760, %v9929_v62  ;;  %v9946_v6 = vand.u32 4294901760, %v1958_v3  ;;  %v1135_v16 = vand.u32 4294901760, %v1134_v11  ;;  %v2417_v19 = vpop.permute.xlu1 %2416  ;;  %v2040_v24 = vsub.f32 %v1960_v17, %v9990_v21 }
 0x1ce   :  { %8911 = vmatpush3.xpose.msra.mxu0 %v1132_v61  ;;  %8878 = vmatmul.mubr.f32.vlgmr.msra.gmra.mrb[2].mxu1 %v9898_v36  ;;  %v1588_v25 = vsub.f32 %v1586_v10, %v1587_v14  ;;  %v2421_v34 = vsel %vm594_vm2, %v2417_v19, 0 }
 0x1cf   :  { %8881 = vmatpush3.xpose.msra.mxu1 %v678_v45  ;;  %8912 = vmatprep.mubr.msk.f32.mxu0 %vm9759_vm1, %v9758_v30  ;;  %v1577_v5 = vsub.f32 %v9929_v62, %v1576_v1  ;;  %v9960_v9 = vsub.f32 %v1958_v3, %v9946_v6  ;;  %v2041_v28 = vand.u32 4294901760, %v2040_v24  ;;  %v2872_v43 = vpop.permute.xlu0 %2871 }
 0x1d0   :  { %8920 = vmatprep.subr.mxu0 %v9758_v30  ;;  %8882 = vmatprep.mubr.msk.f32.mxu1 %vm9759_vm1, %v9758_v30  ;;  %v1589_v33 = vand.u32 4294901760, %v1588_v25  ;;  %v2875_v48 = vsel %vm594_vm2, %v2872_v43, 0 }
 0x1d1   :  { %8913 = vmatmul.mubr.f32.vlgmr.msra.gmra.mrb[4].mxu0 %v9912_v51  ;;  %8885 = vmatprep.subr.mxu1 %v9758_v30  ;;  %v1578_v8 = vand.u32 4294901760, %v1577_v5  ;;  %v2030_v13 = vand.u32 4294901760, %v9960_v9  ;;  %v2870_v26 = vpop.permute.xlu1 %2869  ;;  %v2042_v41 = vsub.f32 %v2040_v24, %v2041_v28  ;;  %v10072_v51 = vand.u32 4294901760, %v2875_v48 }
 0x1d2   :  { %8921 = vmatpush3.xpose.msra.mxu0 %v1133_v2  ;;  %8883 = vmatmul.mubr.f32.vlgmr.msra.gmra.mrb[4].mxu1 %v667_v37  ;;  %v2873_v29 = vsel %vm594_vm2, %v2870_v26, 0  ;;  %v10031_v37 = vand.u32 4294901760, %v2421_v34 }
 0x1d3   :  { %8886 = vmatpush3.xpose.msra.mxu1 %v9902_v42  ;;  %8922 = vmatprep.mubr.msk.f32.mxu0 %vm9759_vm1, %v9758_v30  ;;  %v2031_v18 = vsub.f32 %v9960_v9, %v2030_v13  ;;  %v10024_v35 = vand.u32 4294901760, %v2873_v29  ;;  %v2043_v47 = vand.u32 4294901760, %v2042_v41  ;;  %v3326_v57 = vpop.permute.xlu0 %3325 }
 0x1d4   :  { %8930 = vmatprep.subr.mxu0 %v9758_v30  ;;  %8887 = vmatprep.mubr.msk.f32.mxu1 %vm9759_vm1, %v9758_v30  ;;  %v2501_v40 = vsub.f32 %v2421_v34, %v10031_v37 }
 0x1d5   :  { %8923 = vmatmul.mubr.f32.vlgmr.msra.gmra.mrb[6].mxu0 %v9906_v46  ;;  %8890 = vmatprep.subr.mxu1 %v9758_v30  ;;  %v2032_v22 = vand.u32 4294901760, %v2031_v18 }
 0x1d6   :  { %8931 = vmatpush3.xpose.msra.mxu0 %v9951_v7  ;;  %8888 = vmatmul.mubr.f32.vlgmr.msra.gmra.mrb[6].mxu1 %v668_v38  ;;  %v10041_v38 = vsub.f32 %v2873_v29, %v10024_v35  ;;  %v2502_v45 = vand.u32 4294901760, %v2501_v40 }
 0x1d7   :  { %8891 = vmatpush3.xpose.msra.mxu1 %v679_v50  ;;  %8932 = vmatprep.mubr.msk.f32.mxu0 %vm9759_vm1, %v9758_v30 }
 0x1d8   :  { %8940 = vmatprep.subr.mxu0 %v9758_v30  ;;  %8892 = vmatprep.mubr.msk.f32.mxu1 %vm9759_vm1, %v9758_v30  ;;  %v2945_v44 = vand.u32 4294901760, %v10041_v38  ;;  %v2503_v55 = vsub.f32 %v2501_v40, %v2502_v45 }
 0x1d9   :  { %8933 = vmatmul.mubr.f32.vlgmr.msra.gmra.mrb[8].mxu0 %v1578_v8  ;;  %8895 = vmatprep.subr.mxu1 %v9758_v30 }
 0x1da   :  { %8941 = vmatpush3.xpose.msra.mxu0 %v1586_v10  ;;  %8893 = vmatmul.mubr.f32.vlgmr.msra.gmra.mrb[8].mxu1 %v9898_v36  ;;  %v2946_v49 = vsub.f32 %v10041_v38, %v2945_v44  ;;  %v2504_v61 = vand.u32 4294901760, %v2503_v55 }
 0x1db   :  { %8896 = vmatpush3.xpose.msra.mxu1 %v9902_v42  ;;  %8942 = vmatprep.mubr.msk.f32.mxu0 %vm9759_vm1, %v9758_v30  ;;  %v3324_v42 = vpop.permute.xlu1 %3323 }
 0x1dc   :  { %8950 = vmatprep.subr.mxu0 %v9758_v30  ;;  %8897 = vmatprep.mubr.msk.f32.mxu1 %vm9759_vm1, %v9758_v30 }
 0x1dd   :  { %8943 = vmatmul.mubr.f32.vlgmr.msra.gmra.mrb[10].mxu0 %v9929_v62  ;;  %8905 = vmatprep.subr.mxu1 %v9758_v30  ;;  %v3329_v62 = vsel %vm594_vm2, %v3326_v57, 0 }
 0x1de   :  { %8951 = vmatpush3.xpose.msra.mxu0 %v1587_v14  ;;  %8898 = vmatmul.mubr.f32.vlgmr.msra.gmra.mrb[10].mxu1 %v9898_v36  ;;  %v2492_v36 = vsub.f32 %v10003_v23, %v2491_v27 }
 0x1df   :  { %8906 = vmatpush3.xpose.msra.mxu1 %v1135_v16  ;;  %8952 = vmatprep.mubr.msk.f32.mxu0 %vm9759_vm1, %v9758_v30  ;;  %v3778_v56 = vpop.permute.xlu1 %3777 }
 0x1e0   :  { %8960 = vmatprep.subr.mxu0 %v9758_v30  ;;  %8907 = vmatprep.mubr.msk.f32.mxu1 %vm9759_vm1, %v9758_v30  ;;  %v2493_v39 = vand.u32 4294901760, %v2492_v36  ;;  %v3781_v60 = vsel %vm594_vm2, %v3778_v56, 0 }
 0x1e1   :  { %8953 = vmatmul.mubr.f32.vlgmr.msra.gmra.mrb[12].mxu0 %v9925_v59  ;;  %8915 = vmatprep.subr.mxu1 %v9758_v30  ;;  %v10109_v0 = vand.u32 4294901760, %v3781_v60 }
 0x1e2   :  { %8961 = vmatpush3.xpose.msra.mxu0 %v9990_v21  ;;  %8908 = vmatmul.mubr.f32.vlgmr.msra.gmra.mrb[12].mxu1 %v9906_v46 }
 0x1e3   :  { %8916 = vmatpush3.xpose.msra.mxu1 %v9914_v52  ;;  %8962 = vmatprep.mubr.msk.f32.mxu0 %vm9759_vm1, %v9758_v30  ;;  %v10123_v3 = vsub.f32 %v3781_v60, %v10109_v0 }
 0x1e4   :  { %8970 = vmatprep.subr.mxu0 %v9758_v30  ;;  %8917 = vmatprep.mubr.msk.f32.mxu1 %vm9759_vm1, %v9758_v30 }
 0x1e5   :  { %8963 = vmatmul.mubr.f32.vlgmr.msra.gmra.mrb[14].mxu0 %v2032_v22  ;;  %8925 = vmatprep.subr.mxu1 %v9758_v30 }
 0x1e6   :  { %8971 = vmatpush3.xpose.msra.mxu0 %v2040_v24  ;;  %8918 = vmatmul.mubr.f32.vlgmr.msra.gmra.mrb[14].mxu1 %v1122_v54  ;;  %v2955_v54 = vsub.f32 %v2875_v48, %v10072_v51 }
 0x1e7   :  { %8926 = vmatpush3.xpose.msra.mxu1 %v9914_v52  ;;  %8972 = vmatprep.mubr.msk.f32.mxu0 %vm9759_vm1, %v9758_v30  ;;  %v2947_v52 = vand.u32 4294901760, %v2946_v49 }
 0x1e8   :  { %8980 = vmatprep.subr.mxu0 %v9758_v30  ;;  %8927 = vmatprep.mubr.msk.f32.mxu1 %vm9759_vm1, %v9758_v30 }
 0x1e9   :  { %8973 = vmatmul.mubr.f32.vlgmr.msra.gmra.mrb[16].mxu0 %v9960_v9  ;;  %8935 = vmatprep.subr.mxu1 %v9758_v30 }
 0x1ea   :  { %8981 = vmatpush3.xpose.msra.mxu0 %v2041_v28  ;;  %8928 = vmatmul.mubr.f32.vlgmr.msra.gmra.mrb[16].mxu1 %v9906_v46  ;;  %v3327_v46 = vsel %vm594_vm2, %v3324_v42, 0 }
 0x1eb   :  { %8936 = vmatpush3.xpose.msra.mxu1 %v1589_v33  ;;  %8982 = vmatprep.mubr.msk.f32.mxu0 %vm9759_vm1, %v9758_v30  ;;  %v10068_v50 = vand.u32 4294901760, %v3327_v46 }
 0x1ec   :  { %8990 = vmatprep.subr.mxu0 %v9758_v30  ;;  %8937 = vmatprep.mubr.msk.f32.mxu1 %vm9759_vm1, %v9758_v30 }
 0x1ed   :  { %8983 = vmatmul.mubr.f32.vlgmr.msra.gmra.mrb[18].mxu0 %v9946_v6  ;;  %8945 = vmatprep.subr.mxu1 %v9758_v30  ;;  %v10082_v53 = vsub.f32 %v3327_v46, %v10068_v50 }
 0x1ee   :  { %8991 = vmatpush3.xpose.msra.mxu0 %v10031_v37  ;;  %8938 = vmatmul.mubr.f32.vlgmr.msra.gmra.mrb[18].mxu1 %v9925_v59 }
 0x1ef   :  { %8946 = vmatpush3.xpose.msra.mxu1 %v9951_v7  ;;  %8992 = vmatprep.mubr.msk.f32.mxu0 %vm9759_vm1, %v9758_v30  ;;  %v3399_v58 = vand.u32 4294901760, %v10082_v53 }
 0x1f0   :  { %9000 = vmatprep.subr.mxu0 %v9758_v30  ;;  %8947 = vmatprep.mubr.msk.f32.mxu1 %vm9759_vm1, %v9758_v30 }
 0x1f1   :  { %8993 = vmatmul.mubr.f32.vlgmr.msra.gmra.mrb[20].mxu0 %v2493_v39  ;;  %8955 = vmatprep.subr.mxu1 %v9758_v30  ;;  %v3400_v63 = vsub.f32 %v10082_v53, %v3399_v58  ;;  %v585_v39 = vstv %s584_s20 }
 0x1f2   :  { %9001 = vmatpush3.xpose.msra.mxu0 %v2501_v40  ;;  %8948 = vmatmul.mubr.f32.vlgmr.msra.gmra.mrb[20].mxu1 %v1576_v1  ;;  %v10113_v1 = vand.u32 4294901760, %v3329_v62 }
 0x1f3   :  { %8956 = vmatpush3.xpose.msra.mxu1 %v9951_v7  ;;  %9002 = vmatprep.mubr.msk.f32.mxu0 %vm9759_vm1, %v9758_v30  ;;  %v3401_v2 = vand.u32 4294901760, %v3400_v63  ;;  %v3853_v7 = vand.u32 4294901760, %v10123_v3 }
 0x1f4   :  { %9010 = vmatprep.subr.mxu0 %v9758_v30  ;;  %8957 = vmatprep.mubr.msk.f32.mxu1 %vm9759_vm1, %v9758_v30  ;;  %v3409_v4 = vsub.f32 %v3329_v62, %v10113_v1 }
 0x1f5   :  { %9003 = vmatmul.mubr.f32.vlgmr.msra.gmra.mrb[22].mxu0 %v10003_v23  ;;  %8965 = vmatprep.subr.mxu1 %v9758_v30  ;;  %v3854_v11 = vsub.f32 %v10123_v3, %v3853_v7 }
 0x1f6   :  { %9011 = vmatpush3.xpose.msra.mxu0 %v2502_v45  ;;  %8958 = vmatmul.mubr.f32.vlgmr.msra.gmra.mrb[22].mxu1 %v9925_v59  ;;  %v2956_v59 = vand.u32 4294901760, %v2955_v54  ;;  %v3410_v8 = vand.u32 4294901760, %v3409_v4 }
 0x1f7   :  { %8966 = vmatpush3.xpose.msra.mxu1 %v2043_v47  ;;  %9012 = vmatprep.mubr.msk.f32.mxu0 %vm9759_vm1, %v9758_v30 }
 0x1f8   :  { %9020 = vmatprep.subr.mxu0 %v9758_v30  ;;  %8967 = vmatprep.mubr.msk.f32.mxu1 %vm9759_vm1, %v9758_v30  ;;  %v2957_v5 = vsub.f32 %v2955_v54, %v2956_v59  ;;  %v3411_v15 = vsub.f32 %v3409_v4, %v3410_v8 }
 0x1f9   :  { %9013 = vmatmul.mubr.f32.vlgmr.msra.gmra.mrb[24].mxu0 %v9988_v20  ;;  %8975 = vmatprep.subr.mxu1 %v9758_v30 }
 0x1fa   :  { %9021 = vmatpush3.xpose.msra.mxu0 %v10072_v51  ;;  %8968 = vmatmul.mubr.f32.vlgmr.msra.gmra.mrb[24].mxu1 %v9946_v6  ;;  %v2958_v9 = vand.u32 4294901760, %v2957_v5  ;;  %v3412_v17 = vand.u32 4294901760, %v3411_v15 }
 0x1fb   :  { %8976 = vmatpush3.xpose.msra.mxu1 %v9990_v21  ;;  %9022 = vmatprep.mubr.msk.f32.mxu0 %vm9759_vm1, %v9758_v30 }
 0x1fc   :  { %9030 = vmatprep.subr.mxu0 %v9758_v30  ;;  %8977 = vmatprep.mubr.msk.f32.mxu1 %vm9759_vm1, %v9758_v30 }
 0x1fd   :  { %9023 = vmatmul.mubr.f32.vlgmr.msra.gmra.mrb[26].mxu0 %v2947_v52  ;;  %8985 = vmatprep.subr.mxu1 %v9758_v30 }
 0x1fe   :  { %9031 = vmatpush3.xpose.msra.mxu0 %v2955_v54  ;;  %8978 = vmatmul.mubr.f32.vlgmr.msra.gmra.mrb[26].mxu1 %v2030_v13  ;;  %v3855_v13 = vand.u32 4294901760, %v3854_v11 }
 0x1ff   :  { %8986 = vmatpush3.xpose.msra.mxu1 %v9990_v21  ;;  %9032 = vmatprep.mubr.msk.f32.mxu0 %vm9759_vm1, %v9758_v30 }
 0x200   :  { %9040 = vmatprep.subr.mxu0 %v9758_v30  ;;  %8987 = vmatprep.mubr.msk.f32.mxu1 %vm9759_vm1, %v9758_v30 }
 0x201   :  { %9033 = vmatmul.mubr.f32.vlgmr.msra.gmra.mrb[28].mxu0 %v10041_v38  ;;  %8995 = vmatprep.subr.mxu1 %v9758_v30 }
 0x202   :  { %9041 = vmatpush3.xpose.msra.mxu0 %v2956_v59  ;;  %8988 = vmatmul.mubr.f32.vlgmr.msra.gmra.mrb[28].mxu1 %v9946_v6  ;;  %v3780_v6 = vpop.permute.xlu0 %3779 }
 0x203   :  { %8996 = vmatpush3.xpose.msra.mxu1 %v2504_v61  ;;  %9042 = vmatprep.mubr.msk.f32.mxu0 %vm9759_vm1, %v9758_v30  ;;  %v3783_v10 = vsel %vm594_vm2, %v3780_v6, 0 }
 0x204   :  { %9050 = vmatprep.subr.mxu0 %v9758_v30  ;;  %8997 = vmatprep.mubr.msk.f32.mxu1 %vm9759_vm1, %v9758_v30  ;;  %v3786_v12 = vand.u32 4294901760, %v3783_v10 }
 0x205   :  { %9043 = vmatmul.mubr.f32.vlgmr.msra.gmra.mrb[30].mxu0 %v10024_v35  ;;  %9005 = vmatprep.subr.mxu1 %v9758_v30 }
 0x206   :  { %9051 = vmatpush3.xpose.msra.mxu0 %v10113_v1  ;;  %8998 = vmatmul.mubr.f32.vlgmr.msra.gmra.mrb[30].mxu1 %v9988_v20  ;;  %v3863_v14 = vsub.f32 %v3783_v10, %v3786_v12 }
 0x207   :  { %9006 = vmatpush3.xpose.msra.mxu1 %v10031_v37  ;;  %9052 = vmatprep.mubr.msk.f32.mxu0 %vm9759_vm1, %v9758_v30 }
 0x208   :  { %9060 = vmatprep.subr.mxu0 %v9758_v30  ;;  %9007 = vmatprep.mubr.msk.f32.mxu1 %vm9759_vm1, %v9758_v30  ;;  %v3864_v16 = vand.u32 4294901760, %v3863_v14 }
 0x209   :  { %9053 = vmatmul.mubr.f32.vlgmr.msra.gmra.mrb[32].mxu0 %v3401_v2  ;;  %9015 = vmatprep.subr.mxu1 %v9758_v30 }
 0x20a   :  { %9061 = vmatpush3.xpose.msra.mxu0 %v3409_v4  ;;  %9008 = vmatmul.mubr.f32.vlgmr.msra.gmra.mrb[32].mxu1 %v2491_v27  ;;  %v3865_v18 = vsub.f32 %v3863_v14, %v3864_v16  ;;  %v579_v27 = vlaneseq }
 0x20b   :  { %9016 = vmatpush3.xpose.msra.mxu1 %v10031_v37  ;;  %9062 = vmatprep.mubr.msk.f32.mxu0 %vm9759_vm1, %v9758_v30 }
 0x20c   :  { %9070 = vmatprep.subr.mxu0 %v9758_v30  ;;  %9017 = vmatprep.mubr.msk.f32.mxu1 %vm9759_vm1, %v9758_v30  ;;  %v3866_v19 = vand.u32 4294901760, %v3865_v18  ;;  %v10211_v36 = vshrl.u32 %v579_v27, 7  ;;  %v10213_v37 = vand.u32 127, %v579_v27 }
 0x20d   :  { %9063 = vmatmul.mubr.f32.vlgmr.msra.gmra.mrb[34].mxu0 %v10082_v53  ;;  %9025 = vmatprep.subr.mxu1 %v9758_v30  ;;  %v9767_v53 = vmov -1e+30  }
 0x20e   :  { %9071 = vmatpush3.xpose.msra.mxu0 %v3410_v8  ;;  %9018 = vmatmul.mubr.f32.vlgmr.msra.gmra.mrb[34].mxu1 %v9988_v20  ;;  %vm583_vm3 = vcmp.le.s32.totalorder %v10213_v37, %v10211_v36  ;;  %vm586_vm4 = vcmp.lt.s32.totalorder %v10213_v37, %v585_v39 }
 0x20f   :  { %9026 = vmatpush3.xpose.msra.mxu1 %v2958_v9  ;;  %9072 = vmatprep.mubr.msk.f32.mxu0 %vm9759_vm1, %v9758_v30  ;;  %vm10221_vm5 = vmand %vm583_vm3, %vm586_vm4 }
 0x210   :  { %9080 = vmatprep.subr.mxu0 %v9758_v30  ;;  %9027 = vmatprep.mubr.msk.f32.mxu1 %vm9759_vm1, %v9758_v30  ;;  %v10228_v54 = vsel %vm10221_vm5, 0.0, %v9767_v53 }
 0x211   :  { %9073 = vmatmul.mubr.f32.vlgmr.msra.gmra.mrb[36].mxu0 %v10068_v50  ;;  %9035 = vmatprep.subr.mxu1 %v9758_v30 }
 0x212   :  { %9081 = vmatpush3.xpose.msra.mxu0 %v3786_v12  ;;  %9028 = vmatmul.mubr.f32.vlgmr.msra.gmra.mrb[36].mxu1 %v10024_v35 }
 0x213   :  { %9036 = vmatpush3.xpose.msra.mxu1 %v10072_v51  ;;  %9082 = vmatprep.mubr.msk.f32.mxu0 %vm9759_vm1, %v9758_v30 }
 0x214   :  { %9090 = vmatprep.subr.mxu0 %v9758_v30  ;;  %9037 = vmatprep.mubr.msk.f32.mxu1 %vm9759_vm1, %v9758_v30 }
 0x215   :  { %9083 = vmatmul.mubr.f32.vlgmr.msra.gmra.mrb[38].mxu0 %v3855_v13  ;;  %9045 = vmatprep.subr.mxu1 %v9758_v30 }
 0x216   :  { %9091 = vmatpush3.xpose.msra.mxu0 %v3863_v14  ;;  %9038 = vmatmul.mubr.f32.vlgmr.msra.gmra.mrb[38].mxu1 %v2945_v44 }
 0x217   :  { %9046 = vmatpush3.xpose.msra.mxu1 %v10072_v51  ;;  %9092 = vmatprep.mubr.msk.f32.mxu0 %vm9759_vm1, %v9758_v30 }
 0x218   :  { %9100 = vmatprep.subr.mxu0 %v9758_v30  ;;  %9047 = vmatprep.mubr.msk.f32.mxu1 %vm9759_vm1, %v9758_v30 }
 0x219   :  { %9093 = vmatmul.mubr.f32.vlgmr.msra.gmra.mrb[40].mxu0 %v10123_v3  ;;  %9055 = vmatprep.subr.mxu1 %v9758_v30 }
 0x21a   :  { %9101 = vmatpush3.xpose.msra.mxu0 %v3864_v16  ;;  %9048 = vmatmul.mubr.f32.vlgmr.msra.gmra.mrb[40].mxu1 %v10024_v35 }
 0x21b   :  { %9056 = vmatpush3.xpose.msra.mxu1 %v3412_v17  ;;  %9102 = vmatprep.mubr.msk.f32.mxu0 %vm9759_vm1, %v9758_v30 }
 0x21c   :  { %9057 = vmatprep.mubr.msk.f32.mxu1 %vm9759_vm1, %v9758_v30  ;;  %9065 = vmatprep.subr.mxu1 %v9758_v30 }
 0x21d   :  { %9103 = vmatmul.mubr.f32.vlgmr.msra.gmra.mrb[42].mxu0 %v10109_v0  ;;  %9110 = vmatprep.subr.mxu0 %v9758_v30 }
 0x21e   :  { %9058 = vmatmul.mubr.f32.vlgmr.msra.gmra.mrb[42].mxu1 %v10068_v50  ;;  %9112 = vmatprep.mubr.msk.f32.mxu0 %vm9759_vm1, %v9758_v30 }
 0x21f   :  { %9066 = vmatpush3.xpose.msra.mxu1 %v10113_v1  ;;  %9067 = vmatprep.mubr.msk.f32.mxu1 %vm9759_vm1, %v9758_v30 }
 0x220   :  { %9075 = vmatprep.subr.mxu1 %v9758_v30 }
 0x222   :  { %9068 = vmatmul.mubr.f32.vlgmr.msra.gmra.mrb[44].mxu1 %v3399_v58 }
 0x223   :  { %9076 = vmatpush3.xpose.msra.mxu1 %v10113_v1  ;;  %9077 = vmatprep.mubr.msk.f32.mxu1 %vm9759_vm1, %v9758_v30 }
 0x224   :  { %9085 = vmatprep.subr.mxu1 %v9758_v30 }
 0x226   :  { %9078 = vmatmul.mubr.f32.vlgmr.msra.gmra.mrb[46].mxu1 %v10068_v50 }
 0x227   :  { %9086 = vmatpush3.xpose.msra.mxu1 %v3866_v19  ;;  %9087 = vmatprep.mubr.msk.f32.mxu1 %vm9759_vm1, %v9758_v30 }
 0x228   :  { %9095 = vmatprep.subr.mxu1 %v9758_v30 }
 0x22a   :  { %9088 = vmatmul.mubr.f32.vlgmr.msra.gmra.mrb[48].mxu1 %v10109_v0 }
 0x22b   :  { %9096 = vmatpush3.xpose.msra.mxu1 %v3786_v12  ;;  %9097 = vmatprep.mubr.msk.f32.mxu1 %vm9759_vm1, %v9758_v30 }
 0x22c   :  { %9105 = vmatprep.subr.mxu1 %v9758_v30 }
 0x22e   :  { %9098 = vmatmul.mubr.f32.vlgmr.msra.gmra.mrb[50].mxu1 %v3853_v7 }
 0x22f   :  { %9106 = vmatpush3.xpose.msra.mxu1 %v3786_v12  ;;  %9107 = vmatprep.mubr.msk.f32.mxu1 %vm9759_vm1, %v9758_v30 }
 0x230   :  { %9140 = vmatprep.subr.mxu1 %v9758_v30 }
 0x232   :  { %9108 = vmatmul.mubr.f32.vlgmr.msra.gmra.mrb[52].mxu1 %v10109_v0 }
 0x233   :  { %9142 = vmatprep.mubr.msk.f32.mxu1 %vm9759_vm1, %v9758_v30 }
 0x299   :  { %v672_v20 = vpop.f32.mrb[0].mxu1 }
 0x29a   :  { %v8874_v21 = vpop.f32.mrb[1].mxu1 }
 0x2a0   :  { %v1126_v22 = vpop.f32.mrb[2].mxu0 }
 0x2a1   :  { %v748_v23 = vpop.f32.mrb[2].mxu1  ;;  %v8904_v24 = vpop.f32.mrb[3].mxu0 }
 0x2a2   :  { %v749_v25 = vadd.f32 %v748_v23, %v672_v20  ;;  %v8879_v26 = vpop.f32.mrb[3].mxu1 }
 0x2a4   :  { %v1276_v28 = vpop.f32.mrb[4].mxu0 }
 0x2a5   :  { %v822_v29 = vpop.f32.mrb[4].mxu1  ;;  %v8914_v33 = vpop.f32.mrb[5].mxu0 }
 0x2a6   :  { %v823_v34 = vadd.f32 %v822_v29, %v749_v25  ;;  %v8884_v35 = vpop.f32.mrb[5].mxu1 }
 0x2a8   :  { %v1424_v38 = vpop.f32.mrb[6].mxu0 }
 0x2a9   :  { %v896_v40 = vpop.f32.mrb[6].mxu1  ;;  %v8924_v41 = vpop.f32.mrb[7].mxu0 }
 0x2aa   :  { %v897_v42 = vadd.f32 %v896_v40, %v823_v34  ;;  %v8889_v43 = vpop.f32.mrb[7].mxu1 }
 0x2ac   :  { %v1580_v44 = vpop.f32.mrb[8].mxu0 }
 0x2ad   :  { %v970_v45 = vpop.f32.mrb[8].mxu1  ;;  %v8934_v46 = vpop.f32.mrb[9].mxu0 }
 0x2ae   :  { %v971_v47 = vadd.f32 %v970_v45, %v897_v42  ;;  %v8894_v48 = vpop.f32.mrb[9].mxu1 }
 0x2b0   :  { %v1730_v50 = vpop.f32.mrb[10].mxu0 }
 0x2b1   :  { %v1042_v51 = vpop.f32.mrb[10].mxu1  ;;  %v8944_v52 = vpop.f32.mrb[11].mxu0 }
 0x2b2   :  { %v1043_v55 = vadd.f32 %v1042_v51, %v971_v47  ;;  %v8899_v56 = vpop.f32.mrb[11].mxu1 }
 0x2b4   :  { %v1878_v57 = vpop.f32.mrb[12].mxu0  ;;  %v10231_v58 = vadd.f32 %v1043_v55, %v10228_v54 }
 0x2b5   :  { %v1202_v59 = vpop.f32.mrb[12].mxu1  ;;  %v8954_v60 = vpop.f32.mrb[13].mxu0 }
 0x2b6   :  { %v1203_v61 = vadd.f32 %v1202_v59, %v1126_v22  ;;  %v8909_v62 = vpop.f32.mrb[13].mxu1  ;;  %v4239_v63 = vsel %vm594_vm2, %v10231_v58, -inf }
 0x2b7   :  { %4240 = vmax.xlane.f32.xlu0 %v4239_v63 }
 0x2b8   :  { %v2034_v0 = vpop.f32.mrb[14].mxu0  ;;  %v1277_v1 = vadd.f32 %v1276_v28, %v1203_v61  ;;  %v2409_v61 = vstv %s8573_s21 }
 0x2b9   :  { %v1350_v2 = vpop.f32.mrb[14].mxu1  ;;  %v8964_v3 = vpop.f32.mrb[15].mxu0  ;;  %vm2410_vm6 = vcmp.lt.s32.totalorder %v10213_v37, %v2409_v61 }
 0x2ba   :  { %v1351_v4 = vadd.f32 %v1350_v2, %v1277_v1  ;;  %v8919_v5 = vpop.f32.mrb[15].mxu1  ;;  %vm10254_vm7 = vmand %vm583_vm3, %vm2410_vm6  ;;  %vm8009_vm3 = vcmask 261120  }
 0x2bc   :  { %v2184_v6 = vpop.f32.mrb[16].mxu0  ;;  %v1425_v7 = vadd.f32 %v1424_v38, %v1351_v4 }
 0x2bd   :  { %v1496_v8 = vpop.f32.mrb[16].mxu1  ;;  %v8974_v9 = vpop.f32.mrb[17].mxu0 }
 0x2be   :  { %v1497_v10 = vadd.f32 %v1496_v8, %v1425_v7  ;;  %v8929_v11 = vpop.f32.mrb[17].mxu1 }
 0x2c0   :  { %v2332_v12 = vpop.f32.mrb[18].mxu0  ;;  %v10236_v13 = vadd.f32 %v1497_v10, %v10228_v54 }
 0x2c1   :  { %v1656_v14 = vpop.f32.mrb[18].mxu1  ;;  %v8984_v15 = vpop.f32.mrb[19].mxu0 }
 0x2c2   :  { %v1657_v16 = vadd.f32 %v1656_v14, %v1580_v44  ;;  %v8939_v17 = vpop.f32.mrb[19].mxu1  ;;  %v4242_v18 = vsel %vm594_vm2, %v10236_v13, -inf  ;;  %v2412_v14 = vsel %vm10254_vm7, 0.0, %v9767_v53 }
 0x2c3   :  { %4243 = vmax.xlane.f32.xlu1 %v4242_v18 }
 0x2c4   :  { %v2495_v19 = vpop.f32.mrb[20].mxu0  ;;  %v1731_v20 = vadd.f32 %v1730_v50, %v1657_v16 }
 0x2c5   :  { %v1804_v21 = vpop.f32.mrb[20].mxu1  ;;  %v8994_v22 = vpop.f32.mrb[21].mxu0 }
 0x2c6   :  { %v1805_v23 = vadd.f32 %v1804_v21, %v1731_v20  ;;  %v8949_v24 = vpop.f32.mrb[21].mxu1 }
 0x2c8   :  { %v2645_v25 = vpop.f32.mrb[22].mxu0  ;;  %v1879_v26 = vadd.f32 %v1878_v57, %v1805_v23 }
 0x2c9   :  { %v1950_v27 = vpop.f32.mrb[22].mxu1  ;;  %v9004_v28 = vpop.f32.mrb[23].mxu0 }
 0x2ca   :  { %v1951_v29 = vadd.f32 %v1950_v27, %v1879_v26  ;;  %v8959_v33 = vpop.f32.mrb[23].mxu1 }
 0x2cc   :  { %v2793_v34 = vpop.f32.mrb[24].mxu0  ;;  %v10241_v35 = vadd.f32 %v1951_v29, %v10228_v54 }
 0x2cd   :  { %v2110_v38 = vpop.f32.mrb[24].mxu1  ;;  %v9014_v39 = vpop.f32.mrb[25].mxu0 }
 0x2ce   :  { %v2111_v40 = vadd.f32 %v2110_v38, %v2034_v0  ;;  %v8969_v41 = vpop.f32.mrb[25].mxu1  ;;  %v4245_v42 = vsel %vm594_vm2, %v10241_v35, -inf }
 0x2cf   :  { %4246 = vmax.xlane.f32.xlu0 %v4245_v42 }
 0x2d0   :  { %v2949_v43 = vpop.f32.mrb[26].mxu0  ;;  %v2185_v44 = vadd.f32 %v2184_v6, %v2111_v40 }
 0x2d1   :  { %v2258_v45 = vpop.f32.mrb[26].mxu1  ;;  %v9024_v46 = vpop.f32.mrb[27].mxu0 }
 0x2d2   :  { %v2259_v47 = vadd.f32 %v2258_v45, %v2185_v44  ;;  %v8979_v48 = vpop.f32.mrb[27].mxu1 }
 0x2d4   :  { %v3099_v50 = vpop.f32.mrb[28].mxu0  ;;  %v2333_v51 = vadd.f32 %v2332_v12, %v2259_v47 }
 0x2d5   :  { %v2404_v52 = vpop.f32.mrb[28].mxu1  ;;  %v9034_v55 = vpop.f32.mrb[29].mxu0 }
 0x2d6   :  { %v2405_v56 = vadd.f32 %v2404_v52, %v2333_v51  ;;  %v8989_v57 = vpop.f32.mrb[29].mxu1 }
 0x2d8   :  { %v3247_v59 = vpop.f32.mrb[30].mxu0  ;;  %v10246_v60 = vadd.f32 %v2405_v56, %v10228_v54 }
 0x2d9   :  { %v2571_v62 = vpop.f32.mrb[30].mxu1  ;;  %v9044_v63 = vpop.f32.mrb[31].mxu0 }
 0x2da   :  { %v2572_v0 = vadd.f32 %v2571_v62, %v2495_v19  ;;  %v8999_v1 = vpop.f32.mrb[31].mxu1  ;;  %v4248_v2 = vsel %vm594_vm2, %v10246_v60, -inf }
 0x2db   :  { %4249 = vmax.xlane.f32.xlu0 %v4248_v2 }
 0x2dc   :  { %v3403_v3 = vpop.f32.mrb[32].mxu0  ;;  %v2646_v4 = vadd.f32 %v2645_v25, %v2572_v0 }
 0x2dd   :  { %v2719_v5 = vpop.f32.mrb[32].mxu1  ;;  %v9054_v6 = vpop.f32.mrb[33].mxu0 }
 0x2de   :  { %v2720_v7 = vadd.f32 %v2719_v5, %v2646_v4  ;;  %v9009_v8 = vpop.f32.mrb[33].mxu1 }
 0x2e0   :  { %v3553_v9 = vpop.f32.mrb[34].mxu0  ;;  %v2794_v10 = vadd.f32 %v2793_v34, %v2720_v7 }
 0x2e1   :  { %v2865_v11 = vpop.f32.mrb[34].mxu1  ;;  %v9064_v12 = vpop.f32.mrb[35].mxu0 }
 0x2e2   :  { %v2866_v15 = vadd.f32 %v2865_v11, %v2794_v10  ;;  %v9019_v16 = vpop.f32.mrb[35].mxu1 }
 0x2e4   :  { %v3701_v17 = vpop.f32.mrb[36].mxu0  ;;  %v10261_v18 = vadd.f32 %v2866_v15, %v2412_v14  ;;  %v8572_v15 = vsel %vm10221_vm5, 1.0, %v9758_v30 }
 0x2e5   :  { %v3025_v19 = vpop.f32.mrb[36].mxu1  ;;  %v9074_v20 = vpop.f32.mrb[37].mxu0 }
 0x2e6   :  { %v3026_v36 = vadd.f32 %v3025_v19, %v2949_v43  ;;  %v9029_v37 = vpop.f32.mrb[37].mxu1  ;;  %v4251_v21 = vsel %vm594_vm2, %v10261_v18, -inf }
 0x2e7   :  { %4252 = vmax.xlane.f32.xlu1 %v4251_v21 }
 0x2e8   :  { %v3857_v22 = vpop.f32.mrb[38].mxu0  ;;  %v3100_v23 = vadd.f32 %v3099_v50, %v3026_v36 }
 0x2e9   :  { %v3173_v24 = vpop.f32.mrb[38].mxu1  ;;  %v9084_v25 = vpop.f32.mrb[39].mxu0 }
 0x2ea   :  { %v3174_v26 = vadd.f32 %v3173_v24, %v3100_v23  ;;  %v9039_v27 = vpop.f32.mrb[39].mxu1 }
 0x2ec   :  { %v4007_v53 = vpop.f32.mrb[40].mxu0  ;;  %v3248_v28 = vadd.f32 %v3247_v59, %v3174_v26 }
 0x2ed   :  { %v3319_v29 = vpop.f32.mrb[40].mxu1  ;;  %v9094_v33 = vpop.f32.mrb[41].mxu0 }
 0x2ee   :  { %v3320_v34 = vadd.f32 %v3319_v29, %v3248_v28  ;;  %v9049_v38 = vpop.f32.mrb[41].mxu1 }
 0x2f0   :  { %v4155_v39 = vpop.f32.mrb[42].mxu0  ;;  %v10265_v40 = vadd.f32 %v3320_v34, %v2412_v14 }
 0x2f1   :  { %v3479_v41 = vpop.f32.mrb[42].mxu1  ;;  %v9104_v42 = vpop.f32.mrb[43].mxu0 }
 0x2f2   :  { %v3480_v43 = vadd.f32 %v3479_v41, %v3403_v3  ;;  %v9059_v44 = vpop.f32.mrb[43].mxu1  ;;  %v4254_v45 = vsel %vm594_vm2, %v10265_v40, -inf }
 0x2f3   :  { %4255 = vmax.xlane.f32.xlu0 %v4254_v45 }
 0x2f4   :  { %v3554_v46 = vadd.f32 %v3553_v9, %v3480_v43  ;;  %v10313_v43 = vsel %vm10254_vm7, 1.0, %v9758_v30 }
 0x2f5   :  { %v3627_v47 = vpop.f32.mrb[44].mxu1 }
 0x2f6   :  { %v3628_v48 = vadd.f32 %v3627_v47, %v3554_v46  ;;  %v9069_v50 = vpop.f32.mrb[45].mxu1 }
 0x2f8   :  { %v3702_v51 = vadd.f32 %v3701_v17, %v3628_v48 }
 0x2f9   :  { %v3773_v52 = vpop.f32.mrb[46].mxu1 }
 0x2fa   :  { %v3774_v55 = vadd.f32 %v3773_v52, %v3702_v51  ;;  %v9079_v56 = vpop.f32.mrb[47].mxu1 }
 0x2fc   :  { %v10269_v57 = vadd.f32 %v3774_v55, %v2412_v14 }
 0x2fd   :  { %v3933_v59 = vpop.f32.mrb[48].mxu1 }
 0x2fe   :  { %v3934_v61 = vadd.f32 %v3933_v59, %v3857_v22  ;;  %v9089_v62 = vpop.f32.mrb[49].mxu1  ;;  %v4257_v25 = vsel %vm594_vm2, %v10269_v57, -inf }
 0x300   :  { %v4008_v63 = vadd.f32 %v4007_v53, %v3934_v61 }
 0x301   :  { %v4081_v0 = vpop.f32.mrb[50].mxu1 }
 0x302   :  { %v4082_v1 = vadd.f32 %v4081_v0, %v4008_v63  ;;  %v9099_v2 = vpop.f32.mrb[51].mxu1 }
 0x304   :  { %v4156_v3 = vadd.f32 %v4155_v39, %v4082_v1 }
 0x305   :  { %v4227_v4 = vpop.f32.mrb[52].mxu1 }
 0x306   :  { %v4228_v5 = vadd.f32 %v4227_v4, %v4156_v3  ;;  %v9109_v6 = vpop.f32.mrb[53].mxu1 }
 0x308   :  { %v10271_v7 = vadd.f32 %v4228_v5, %v2412_v14 }
 0x30a   :  { %v4260_v53 = vsel %vm594_vm2, %v10271_v7, -inf }
 0x344   :  { %v4241_v8 = vpop.xlane.xlu0 %4240 }
 0x345   :  { %v4263_v9 = vsub.f32 %v10231_v58, %v4241_v8 }
 0x347   :  { %v4271_v10 = vmul.f32 1.442695, %v4263_v9 }
 0x349   :  { %9614 = vpow2.f32 %v4271_v10 }
 0x350   :  { %v4244_v11 = vpop.xlane.xlu1 %4243 }
 0x351   :  { %v4264_v12 = vsub.f32 %v10236_v13, %v4244_v11 }
 0x353   :  { %v9615_v16 = vpop.eup %9614  ;;  %v4273_v17 = vmul.f32 1.442695, %v4264_v12 }
 0x354   :  { %v10278_v19 = vmul.f32 %v9615_v16, %v8572_v15 }
 0x355   :  { %9616 = vpow2.f32 %v4273_v17 }
 0x356   :  { %v4295_v14 = vsel %vm594_vm2, %v10278_v19, 0.0 }
 0x357   :  { %4296 = vadd.xlane.f32.xlu1 %v4295_v14 }
 0x35c   :  { %v4247_v49 = vpop.xlane.xlu0 %4246 }
 0x35d   :  { %v4265_v13 = vsub.f32 %v10241_v35, %v4247_v49 }
 0x35f   :  { %v9617_v20 = vpop.eup %9616  ;;  %v4275_v37 = vmul.f32 1.442695, %v4265_v13 }
 0x360   :  { %v10282_v58 = vmul.f32 %v9617_v20, %v8572_v15 }
 0x361   :  { %9618 = vpow2.f32 %v4275_v37 }
 0x362   :  { %v4298_v36 = vsel %vm594_vm2, %v10282_v58, 0.0 }
 0x363   :  { %4299 = vadd.xlane.f32.xlu0 %v4298_v36 }
 0x368   :  { %4351 = vrot.lane.b32.xlu1 %v9880_v32, %s9768_s22  ;;  %v4250_v21 = vpop.xlane.xlu0 %4249 }
 0x369   :  { %v4266_v22 = vsub.f32 %v10246_v60, %v4250_v21 }
 0x36b   :  { %v4277_v23 = vmul.f32 1.442695, %v4266_v22  ;;  %v9619_v24 = vpop.eup %9618 }
 0x36c   :  { %v10294_v26 = vmul.f32 %v9619_v24, %v8572_v15 }
 0x36d   :  { %9620 = vpow2.f32 %v4277_v23 }
 0x36e   :  { %v4301_v35 = vsel %vm594_vm2, %v10294_v26, 0.0 }
 0x374   :  { %v4253_v29 = vpop.xlane.xlu1 %4252 }
 0x375   :  { %v4267_v33 = vsub.f32 %v10261_v18, %v4253_v29 }
 0x377   :  { %v9621_v27 = vpop.eup %9620  ;;  %v4279_v34 = vmul.f32 1.442695, %v4267_v33 }
 0x378   :  { %v10300_v28 = vmul.f32 %v9621_v27, %v8572_v15 }
 0x379   :  { %4803 = vrot.lane.b32.xlu0 %v9880_v32, %s9769_s23  ;;  %9622 = vpow2.f32 %v4279_v34 }
 0x37a   :  { %v4304_v60 = vsel %vm594_vm2, %v10300_v28, 0.0 }
 0x380   :  { %v4256_v38 = vpop.xlane.xlu0 %4255 }
 0x381   :  { %v4268_v39 = vsub.f32 %v10265_v40, %v4256_v38 }
 0x383   :  { %v4281_v41 = vmul.f32 1.442695, %v4268_v39  ;;  %v9623_v42 = vpop.eup %9622 }
 0x384   :  { %v10316_v44 = vmul.f32 %v9623_v42, %v10313_v43 }
 0x385   :  { %9624 = vpow2.f32 %v4281_v41 }
 0x386   :  { %v4307_v18 = vsel %vm594_vm2, %v10316_v44, 0.0 }
 0x38c   :  { %4258 = vmax.xlane.f32.xlu1 %v4257_v25 }
 0x38f   :  { %v9625_v45 = vpop.eup %9624 }
 0x390   :  { %4302 = vadd.xlane.f32.xlu1 %v4301_v35  ;;  %v10321_v46 = vmul.f32 %v9625_v45, %v10313_v43 }
 0x392   :  { %v4310_v40 = vsel %vm594_vm2, %v10321_v46, 0.0 }
 0x398   :  { %4261 = vmax.xlane.f32.xlu0 %v4260_v53 }
 0x39c   :  { %4305 = vadd.xlane.f32.xlu0 %v4304_v60 }
 0x3a1   :  { %5255 = vrot.lane.b32.xlu1 %v9880_v32, %s9770_s24 }
 0x3b2   :  { %5707 = vrot.lane.b32.xlu0 %v9880_v32, %s9771_s25 }
 0x3c5   :  { %4308 = vadd.xlane.f32.xlu1 %v4307_v18 }
 0x3d1   :  { %4311 = vadd.xlane.f32.xlu0 %v4310_v40 }
 0x3d6   :  { %6175 = vrot.lane.b32.xlu1 %v9878_v31, %s9768_s22 }
 0x3e4   :  { %v4297_v54 = vpop.xlane.xlu1 %4296 }
 0x3e5   :  { %9626 = vrcp.f32 %v4297_v54  ;;  %vm4319_vm8 = vcmp.gt.f32.partialorder %v4297_v54, 0.0 }
 0x3e7   :  { %6627 = vrot.lane.b32.xlu0 %v9878_v31, %s9769_s23 }
 0x3e8   :  { %v4352_v47 = vpop.permute.xlu1 %4351 }
 0x3e9   :  { %v10329_v48 = vand.u32 4294901760, %v4352_v47 }
 0x3eb   :  { %9111 = vmatpush3.msra.mxu0 %v10329_v48  ;;  %v4435_v56 = vsub.f32 %v4352_v47, %v10329_v48 }
 0x3ec   :  { %9115 = vmatprep.subr.mxu0 %v9758_v30 }
 0x3ed   :  { %v4436_v63 = vand.u32 4294901760, %v4435_v56 }
 0x3ef   :  { %v9627_v50 = vpop.eup %9626  ;;  %v4437_v3 = vsub.f32 %v4435_v56, %v4436_v63 }
 0x3f0   :  { %v4335_v51 = vsel %vm4319_vm8, %v9627_v50, 0.0  ;;  %v4300_v52 = vpop.xlane.xlu0 %4299 }
 0x3f1   :  { %v4343_v55 = vmul.f32 %v4335_v51, %v10278_v19  ;;  %9628 = vrcp.f32 %v4300_v52  ;;  %vm4320_vm9 = vcmp.gt.f32.partialorder %v4300_v52, 0.0  ;;  %v4438_v9 = vand.u32 4294901760, %v4437_v3 }
 0x3f3   :  { %v4355_v59 = vsel %vm594_vm2, %v4343_v55, 0 }
 0x3f4   :  { %v10336_v61 = vand.u32 4294901760, %v4355_v59  ;;  %v4804_v62 = vpop.permute.xlu0 %4803 }
 0x3f5   :  { %v10338_v0 = vand.u32 4294901760, %v4804_v62 }
 0x3f6   :  { %v4424_v1 = vsub.f32 %v4355_v59, %v10336_v61 }
 0x3f7   :  { %9141 = vmatpush3.msra.mxu1 %v10338_v0  ;;  %v4887_v11 = vsub.f32 %v4804_v62, %v10338_v0 }
 0x3f8   :  { %v4425_v2 = vand.u32 4294901760, %v4424_v1  ;;  %9145 = vmatprep.subr.mxu1 %v9758_v30 }
 0x3f9   :  { %v4888_v16 = vand.u32 4294901760, %v4887_v11 }
 0x3fa   :  { %v4426_v4 = vsub.f32 %v4424_v1, %v4425_v2 }
 0x3fb   :  { %v9629_v5 = vpop.eup %9628  ;;  %v4889_v14 = vsub.f32 %v4887_v11, %v4888_v16 }
 0x3fc   :  { %v4336_v6 = vsel %vm4320_vm9, %v9629_v5, 0.0  ;;  %v4427_v8 = vand.u32 4294901760, %v4426_v4 }
 0x3fd   :  { %v4344_v10 = vmul.f32 %v4336_v6, %v10282_v58  ;;  %v4890_v36 = vand.u32 4294901760, %v4889_v14 }
 0x3fe   :  { %9113 = vmatmul.mubr.f32.vlgmr.msra.gmra.mrb[44].mxu0 %v4427_v8 }
 0x3ff   :  { %v4807_v12 = vsel %vm594_vm2, %v4344_v10, 0  ;;  %9116 = vmatpush3.msra.mxu0 %v4438_v9  ;;  %9117 = vmatprep.mubr.msk.f32.mxu0 %vm9759_vm1, %v9758_v30 }
 0x400   :  { %v10348_v15 = vand.u32 4294901760, %v4807_v12  ;;  %9120 = vmatprep.subr.mxu0 %v9758_v30 }
 0x402   :  { %v4876_v17 = vsub.f32 %v4807_v12, %v10348_v15 }
 0x404   :  { %v4877_v19 = vand.u32 4294901760, %v4876_v17 }
 0x406   :  { %9118 = vmatmul.mubr.f32.vlgmr.msra.gmra.mrb[44].mxu0 %v10336_v61  ;;  %v4878_v20 = vsub.f32 %v4876_v17, %v4877_v19 }
 0x407   :  { %9121 = vmatpush3.msra.mxu0 %v4435_v56  ;;  %9122 = vmatprep.mubr.msk.f32.mxu0 %vm9759_vm1, %v9758_v30 }
 0x408   :  { %v4879_v58 = vand.u32 4294901760, %v4878_v20  ;;  %9125 = vmatprep.subr.mxu0 %v9758_v30 }
 0x40a   :  { %9143 = vmatmul.mubr.f32.vlgmr.msra.gmra.mrb[54].mxu1 %v4879_v58 }
 0x40b   :  { %9146 = vmatpush3.msra.mxu1 %v4890_v36  ;;  %9147 = vmatprep.mubr.msk.f32.mxu1 %vm9759_vm1, %v9758_v30 }
 0x40c   :  { %9150 = vmatprep.subr.mxu1 %v9758_v30 }
 0x40e   :  { %9123 = vmatmul.mubr.f32.vlgmr.msra.gmra.mrb[44].mxu0 %v4424_v1 }
 0x40f   :  { %9126 = vmatpush3.msra.mxu0 %v10329_v48  ;;  %9127 = vmatprep.mubr.msk.f32.mxu0 %vm9759_vm1, %v9758_v30 }
 0x410   :  { %9130 = vmatprep.subr.mxu0 %v9758_v30 }
 0x412   :  { %9148 = vmatmul.mubr.f32.vlgmr.msra.gmra.mrb[54].mxu1 %v10348_v15 }
 0x413   :  { %9151 = vmatpush3.msra.mxu1 %v4887_v11  ;;  %9152 = vmatprep.mubr.msk.f32.mxu1 %vm9759_vm1, %v9758_v30 }
 0x414   :  { %9155 = vmatprep.subr.mxu1 %v9758_v30 }
 0x416   :  { %9128 = vmatmul.mubr.f32.vlgmr.msra.gmra.mrb[44].mxu0 %v4425_v2 }
 0x417   :  { %9131 = vmatpush3.msra.mxu0 %v4436_v63  ;;  %9132 = vmatprep.mubr.msk.f32.mxu0 %vm9759_vm1, %v9758_v30 }
 0x418   :  { %9135 = vmatprep.subr.mxu0 %v9758_v30 }
 0x419   :  { %v4259_v49 = vpop.xlane.xlu1 %4258 }
 0x41a   :  { %v4269_v13 = vsub.f32 %v10269_v57, %v4259_v49  ;;  %9153 = vmatmul.mubr.f32.vlgmr.msra.gmra.mrb[54].mxu1 %v4876_v17 }
 0x41b   :  { %9156 = vmatpush3.msra.mxu1 %v10338_v0  ;;  %9157 = vmatprep.mubr.msk.f32.mxu1 %vm9759_vm1, %v9758_v30 }
 0x41c   :  { %v4283_v37 = vmul.f32 1.442695, %v4269_v13  ;;  %9160 = vmatprep.subr.mxu1 %v9758_v30 }
 0x41d   :  { %v4303_v21 = vpop.xlane.xlu1 %4302 }
 0x41e   :  { %9630 = vpow2.f32 %v4283_v37  ;;  %9133 = vmatmul.mubr.f32.vlgmr.msra.gmra.mrb[44].mxu0 %v10336_v61  ;;  %vm4321_vm10 = vcmp.gt.f32.partialorder %v4303_v21, 0.0 }
 0x41f   :  { %9632 = vrcp.f32 %v4303_v21  ;;  %9136 = vmatpush3.msra.mxu0 %v10329_v48  ;;  %9137 = vmatprep.mubr.msk.f32.mxu0 %vm9759_vm1, %v9758_v30 }
 0x420   :  { %9170 = vmatprep.subr.mxu0 %v9758_v30 }
 0x421   :  { %v5256_v57 = vpop.permute.xlu1 %5255 }
 0x422   :  { %9158 = vmatmul.mubr.f32.vlgmr.msra.gmra.mrb[54].mxu1 %v4877_v19  ;;  %v10383_v22 = vand.u32 4294901760, %v5256_v57 }
 0x423   :  { %9161 = vmatpush3.msra.mxu1 %v4888_v16  ;;  %9162 = vmatprep.mubr.msk.f32.mxu1 %vm9759_vm1, %v9758_v30 }
 0x424   :  { %9165 = vmatprep.subr.mxu1 %v9758_v30  ;;  %v10397_v33 = vsub.f32 %v5256_v57, %v10383_v22 }
 0x425   :  { %v4262_v23 = vpop.xlane.xlu0 %4261 }
 0x426   :  { %v4270_v24 = vsub.f32 %v10271_v7, %v4262_v23  ;;  %9138 = vmatmul.mubr.f32.vlgmr.msra.gmra.mrb[44].mxu0 %v10336_v61  ;;  %v5340_v41 = vand.u32 4294901760, %v10397_v33 }
 0x427   :  { %9171 = vmatpush3.msra.mxu0 %v10383_v22  ;;  %9172 = vmatprep.mubr.msk.f32.mxu0 %vm9759_vm1, %v9758_v30 }
 0x428   :  { %v9631_v25 = vpop.eup %9630  ;;  %v4285_v35 = vmul.f32 1.442695, %v4270_v24  ;;  %9175 = vmatprep.subr.mxu0 %v9758_v30  ;;  %v5341_v40 = vsub.f32 %v10397_v33, %v5340_v41 }
 0x429   :  { %v9633_v27 = vpop.eup %9632  ;;  %v4306_v53 = vpop.xlane.xlu0 %4305  ;;  %v10392_v60 = vmul.f32 %v9631_v25, %v10313_v43 }
 0x42a   :  { %v4337_v29 = vsel %vm4321_vm10, %v9633_v27, 0.0  ;;  %9634 = vpow2.f32 %v4285_v35  ;;  %9163 = vmatmul.mubr.f32.vlgmr.msra.gmra.mrb[54].mxu1 %v10348_v15  ;;  %vm4322_vm11 = vcmp.gt.f32.partialorder %v4306_v53, 0.0  ;;  %v5342_v55 = vand.u32 4294901760, %v5341_v40 }
 0x42b   :  { %v4345_v7 = vmul.f32 %v4337_v29, %v10294_v26  ;;  %9636 = vrcp.f32 %v4306_v53  ;;  %9166 = vmatpush3.msra.mxu1 %v10338_v0  ;;  %v4313_v34 = vsel %vm594_vm2, %v10392_v60, 0.0  ;;  %9167 = vmatprep.mubr.msk.f32.mxu1 %vm9759_vm1, %v9758_v30 }
 0x42c   :  { %4314 = vadd.xlane.f32.xlu1 %v4313_v34  ;;  %9200 = vmatprep.subr.mxu1 %v9758_v30 }
 0x42d   :  { %v5259_v38 = vsel %vm594_vm2, %v4345_v7, 0  ;;  %v5708_v26 = vpop.permute.xlu0 %5707 }
 0x42e   :  { %v10406_v39 = vand.u32 4294901760, %v5259_v38  ;;  %v10410_v18 = vand.u32 4294901760, %v5708_v26 }
 0x430   :  { %v5328_v42 = vsub.f32 %v5259_v38, %v10406_v39  ;;  %v5791_v59 = vsub.f32 %v5708_v26, %v10410_v18 }
 0x432   :  { %9168 = vmatmul.mubr.f32.vlgmr.msra.gmra.mrb[54].mxu1 %v10348_v15  ;;  %v5329_v45 = vand.u32 4294901760, %v5328_v42  ;;  %v5792_v63 = vand.u32 4294901760, %v5791_v59 }
 0x433   :  { %9201 = vmatpush3.msra.mxu1 %v10410_v18  ;;  %9202 = vmatprep.mubr.msk.f32.mxu1 %vm9759_vm1, %v9758_v30 }
 0x434   :  { %v9635_v54 = vpop.eup %9634  ;;  %v5330_v47 = vsub.f32 %v5328_v42, %v5329_v45  ;;  %9205 = vmatprep.subr.mxu1 %v9758_v30  ;;  %v5793_v1 = vsub.f32 %v5791_v59, %v5792_v63 }
 0x435   :  { %v9637_v48 = vpop.eup %9636  ;;  %v10419_v50 = vmul.f32 %v9635_v54, %v10313_v43 }
 0x436   :  { %v4338_v51 = vsel %vm4322_vm11, %v9637_v48, 0.0  ;;  %v5331_v52 = vand.u32 4294901760, %v5330_v47  ;;  %v5794_v4 = vand.u32 4294901760, %v5793_v1 }
 0x437   :  { %v4346_v56 = vmul.f32 %v4338_v51, %v10300_v28  ;;  %v4316_v61 = vsel %vm594_vm2, %v10419_v50, 0.0 }
 0x438   :  { %9173 = vmatmul.mubr.f32.vlgmr.msra.gmra.mrb[46].mxu0 %v5331_v52  ;;  %4317 = vadd.xlane.f32.xlu0 %v4316_v61 }
 0x439   :  { %v5711_v62 = vsel %vm594_vm2, %v4346_v56, 0  ;;  %9176 = vmatpush3.msra.mxu0 %v5342_v55  ;;  %9177 = vmatprep.mubr.msk.f32.mxu0 %vm9759_vm1, %v9758_v30 }
 0x43a   :  { %v10428_v43 = vand.u32 4294901760, %v5711_v62  ;;  %9180 = vmatprep.subr.mxu0 %v9758_v30 }
 0x43c   :  { %v5780_v28 = vsub.f32 %v5711_v62, %v10428_v43 }
 0x43d   :  { %7079 = vrot.lane.b32.xlu1 %v9878_v31, %s9770_s24 }
 0x43e   :  { %v5781_v0 = vand.u32 4294901760, %v5780_v28 }
 0x440   :  { %9178 = vmatmul.mubr.f32.vlgmr.msra.gmra.mrb[46].mxu0 %v10406_v39  ;;  %v5782_v2 = vsub.f32 %v5780_v28, %v5781_v0 }
 0x441   :  { %9181 = vmatpush3.msra.mxu0 %v10397_v33  ;;  %9182 = vmatprep.mubr.msk.f32.mxu0 %vm9759_vm1, %v9758_v30 }
 0x442   :  { %v5783_v3 = vand.u32 4294901760, %v5782_v2  ;;  %9185 = vmatprep.subr.mxu0 %v9758_v30 }
 0x444   :  { %9203 = vmatmul.mubr.f32.vlgmr.msra.gmra.mrb[56].mxu1 %v5783_v3 }
 0x445   :  { %9206 = vmatpush3.msra.mxu1 %v5794_v4  ;;  %9207 = vmatprep.mubr.msk.f32.mxu1 %vm9759_vm1, %v9758_v30 }
 0x446   :  { %9210 = vmatprep.subr.mxu1 %v9758_v30 }
 0x448   :  { %9183 = vmatmul.mubr.f32.vlgmr.msra.gmra.mrb[46].mxu0 %v5328_v42 }
 0x449   :  { %9186 = vmatpush3.msra.mxu0 %v10383_v22  ;;  %9187 = vmatprep.mubr.msk.f32.mxu0 %vm9759_vm1, %v9758_v30 }
 0x44a   :  { %9190 = vmatprep.subr.mxu0 %v9758_v30 }
 0x44c   :  { %9208 = vmatmul.mubr.f32.vlgmr.msra.gmra.mrb[56].mxu1 %v10428_v43 }
 0x44d   :  { %9211 = vmatpush3.msra.mxu1 %v5791_v59  ;;  %9212 = vmatprep.mubr.msk.f32.mxu1 %vm9759_vm1, %v9758_v30 }
 0x44e   :  { %7531 = vrot.lane.b32.xlu0 %v9878_v31, %s9771_s25  ;;  %9215 = vmatprep.subr.mxu1 %v9758_v30 }
 0x450   :  { %9188 = vmatmul.mubr.f32.vlgmr.msra.gmra.mrb[46].mxu0 %v5329_v45 }
 0x451   :  { %9191 = vmatpush3.msra.mxu0 %v5340_v41  ;;  %9192 = vmatprep.mubr.msk.f32.mxu0 %vm9759_vm1, %v9758_v30 }
 0x452   :  { %v4309_v5 = vpop.xlane.xlu1 %4308  ;;  %9195 = vmatprep.subr.mxu0 %v9758_v30 }
 0x453   :  { %9638 = vrcp.f32 %v4309_v5  ;;  %vm4323_vm12 = vcmp.gt.f32.partialorder %v4309_v5, 0.0 }
 0x454   :  { %9213 = vmatmul.mubr.f32.vlgmr.msra.gmra.mrb[56].mxu1 %v5780_v28 }
 0x455   :  { %9216 = vmatpush3.msra.mxu1 %v10410_v18  ;;  %9217 = vmatprep.mubr.msk.f32.mxu1 %vm9759_vm1, %v9758_v30 }
 0x456   :  { %9220 = vmatprep.subr.mxu1 %v9758_v30  ;;  %v6176_v6 = vpop.permute.xlu1 %6175 }
 0x457   :  { %v10464_v8 = vand.u32 4294901760, %v6176_v6 }
 0x458   :  { %9193 = vmatmul.mubr.f32.vlgmr.msra.gmra.mrb[46].mxu0 %v10406_v39 }
 0x459   :  { %9196 = vmatpush3.msra.mxu0 %v10383_v22  ;;  %9197 = vmatprep.mubr.msk.f32.mxu0 %vm9759_vm1, %v9758_v30  ;;  %v6259_v15 = vsub.f32 %v6176_v6, %v10464_v8 }
 0x45a   :  { %9230 = vmatprep.subr.mxu0 %v9758_v30 }
 0x45b   :  { %v6260_v19 = vand.u32 4294901760, %v6259_v15 }
 0x45c   :  { %9218 = vmatmul.mubr.f32.vlgmr.msra.gmra.mrb[56].mxu1 %v5781_v0 }
 0x45d   :  { %v9639_v9 = vpop.eup %9638  ;;  %9221 = vmatpush3.msra.mxu1 %v5792_v63  ;;  %9222 = vmatprep.mubr.msk.f32.mxu1 %vm9759_vm1, %v9758_v30  ;;  %v6261_v58 = vsub.f32 %v6259_v15, %v6260_v19 }
 0x45e   :  { %v4339_v10 = vsel %vm4323_vm12, %v9639_v9, 0.0  ;;  %v4312_v11 = vpop.xlane.xlu0 %4311  ;;  %9225 = vmatprep.subr.mxu1 %v9758_v30 }
 0x45f   :  { %v4347_v12 = vmul.f32 %v4339_v10, %v10316_v44  ;;  %9640 = vrcp.f32 %v4312_v11  ;;  %vm4324_vm13 = vcmp.gt.f32.partialorder %v4312_v11, 0.0  ;;  %v6262_v57 = vand.u32 4294901760, %v6261_v58 }
 0x460   :  { %9198 = vmatmul.mubr.f32.vlgmr.msra.gmra.mrb[46].mxu0 %v10406_v39 }
 0x461   :  { %v6179_v16 = vsel %vm594_vm2, %v4347_v12, 0  ;;  %9231 = vmatpush3.msra.mxu0 %v10464_v8  ;;  %9232 = vmatprep.mubr.msk.f32.mxu0 %vm9759_vm1, %v9758_v30 }
 0x462   :  { %v10476_v17 = vand.u32 4294901760, %v6179_v16  ;;  %9235 = vmatprep.subr.mxu0 %v9758_v30  ;;  %v6628_v44 = vpop.permute.xlu0 %6627 }
 0x463   :  { %v6634_v36 = vand.u32 4294901760, %v6628_v44 }
 0x464   :  { %v6248_v14 = vsub.f32 %v6179_v16, %v10476_v17  ;;  %9223 = vmatmul.mubr.f32.vlgmr.msra.gmra.mrb[56].mxu1 %v10428_v43 }
 0x465   :  { %9226 = vmatpush3.msra.mxu1 %v10410_v18  ;;  %9227 = vmatprep.mubr.msk.f32.mxu1 %vm9759_vm1, %v9758_v30  ;;  %v6711_v23 = vsub.f32 %v6628_v44, %v6634_v36 }
 0x466   :  { %9260 = vmatprep.subr.mxu1 %v9758_v30  ;;  %v6249_v20 = vand.u32 4294901760, %v6248_v14 }
 0x467   :  { %v6712_v35 = vand.u32 4294901760, %v6711_v23 }
 0x468   :  { %v6250_v49 = vsub.f32 %v6248_v14, %v6249_v20 }
 0x469   :  { %v9641_v13 = vpop.eup %9640  ;;  %v6713_v53 = vsub.f32 %v6711_v23, %v6712_v35 }
 0x46a   :  { %v4340_v37 = vsel %vm4324_vm13, %v9641_v13, 0.0  ;;  %v6251_v21 = vand.u32 4294901760, %v6250_v49 }
 0x46b   :  { %v4348_v22 = vmul.f32 %v4340_v37, %v10321_v46  ;;  %v6714_v33 = vand.u32 4294901760, %v6713_v53 }
 0x46c   :  { %9228 = vmatmul.mubr.f32.vlgmr.msra.gmra.mrb[56].mxu1 %v10428_v43  ;;  %9233 = vmatmul.mubr.f32.vlgmr.msra.gmra.mrb[48].mxu0 %v6251_v21 }
 0x46d   :  { %v6631_v24 = vsel %vm594_vm2, %v4348_v22, 0  ;;  %9261 = vmatpush3.msra.mxu1 %v6634_v36  ;;  %9236 = vmatpush3.msra.mxu0 %v6262_v57 }
 0x46e   :  { %v6699_v25 = vand.u32 4294901760, %v6631_v24  ;;  %9237 = vmatprep.mubr.msk.f32.mxu0 %vm9759_vm1, %v9758_v30  ;;  %9240 = vmatprep.subr.mxu0 %v9758_v30 }
 0x46f   :  { %9262 = vmatprep.mubr.msk.f32.mxu1 %vm9759_vm1, %v9758_v30  ;;  %9265 = vmatprep.subr.mxu1 %v9758_v30 }
 0x470   :  { %v6700_v46 = vsub.f32 %v6631_v24, %v6699_v25 }
 0x472   :  { %v6701_v27 = vand.u32 4294901760, %v6700_v46 }
 0x474   :  { %9238 = vmatmul.mubr.f32.vlgmr.msra.gmra.mrb[48].mxu0 %v10476_v17  ;;  %v6702_v29 = vsub.f32 %v6700_v46, %v6701_v27 }
 0x475   :  { %9241 = vmatpush3.msra.mxu0 %v6259_v15  ;;  %9242 = vmatprep.mubr.msk.f32.mxu0 %vm9759_vm1, %v9758_v30 }
 0x476   :  { %v6703_v7 = vand.u32 4294901760, %v6702_v29  ;;  %9245 = vmatprep.subr.mxu0 %v9758_v30 }
 0x478   :  { %9263 = vmatmul.mubr.f32.vlgmr.msra.gmra.mrb[58].mxu1 %v6703_v7 }
 0x479   :  { %9266 = vmatpush3.msra.mxu1 %v6714_v33  ;;  %9267 = vmatprep.mubr.msk.f32.mxu1 %vm9759_vm1, %v9758_v30 }
 0x47a   :  { %9270 = vmatprep.subr.mxu1 %v9758_v30 }
 0x47c   :  { %9243 = vmatmul.mubr.f32.vlgmr.msra.gmra.mrb[48].mxu0 %v6248_v14 }
 0x47d   :  { %9246 = vmatpush3.msra.mxu0 %v10464_v8  ;;  %9247 = vmatprep.mubr.msk.f32.mxu0 %vm9759_vm1, %v9758_v30 }
 0x47e   :  { %9250 = vmatprep.subr.mxu0 %v9758_v30 }
 0x480   :  { %9268 = vmatmul.mubr.f32.vlgmr.msra.gmra.mrb[58].mxu1 %v6699_v25 }
 0x481   :  { %9271 = vmatpush3.msra.mxu1 %v6711_v23  ;;  %9272 = vmatprep.mubr.msk.f32.mxu1 %vm9759_vm1, %v9758_v30 }
 0x482   :  { %9275 = vmatprep.subr.mxu1 %v9758_v30 }
 0x484   :  { %9248 = vmatmul.mubr.f32.vlgmr.msra.gmra.mrb[48].mxu0 %v6249_v20 }
 0x485   :  { %9251 = vmatpush3.msra.mxu0 %v6260_v19  ;;  %9252 = vmatprep.mubr.msk.f32.mxu0 %vm9759_vm1, %v9758_v30 }
 0x486   :  { %9255 = vmatprep.subr.mxu0 %v9758_v30 }
 0x488   :  { %9273 = vmatmul.mubr.f32.vlgmr.msra.gmra.mrb[58].mxu1 %v6700_v46  ;;  %v7998_v46 = vld [vmem:[#allocation9] sm:$0xff] }
 0x489   :  { %9276 = vmatpush3.msra.mxu1 %v6634_v36  ;;  %9277 = vmatprep.mubr.msk.f32.mxu1 %vm9759_vm1, %v9758_v30  ;;  %v8017_v53 = vand.u32 4294901760, %v7998_v46 }
 0x48a   :  { %9280 = vmatprep.subr.mxu1 %v9758_v30 }
 0x48c   :  { %9253 = vmatmul.mubr.f32.vlgmr.msra.gmra.mrb[48].mxu0 %v10476_v17 }
 0x48d   :  { %9256 = vmatpush3.msra.mxu0 %v10464_v8  ;;  %9257 = vmatprep.mubr.msk.f32.mxu0 %vm9759_vm1, %v9758_v30 }
 0x48e   :  { %9290 = vmatprep.subr.mxu0 %v9758_v30 }
 0x490   :  { %9278 = vmatmul.mubr.f32.vlgmr.msra.gmra.mrb[58].mxu1 %v6701_v27  ;;  %v7999_v27 = vld [vmem:[#allocation9 + $0x8] sm:$0xff] }
 0x491   :  { %9281 = vmatpush3.msra.mxu1 %v6712_v35  ;;  %9282 = vmatprep.mubr.msk.f32.mxu1 %vm9759_vm1, %v9758_v30  ;;  %v8020_v29 = vand.u32 4294901760, %v7999_v27 }
 0x492   :  { %9285 = vmatprep.subr.mxu1 %v9758_v30 }
 0x493   :  { %v10587_v33 = vpack.c.bf16 %v8020_v29, %v8017_v53 }
 0x494   :  { %9258 = vmatmul.mubr.f32.vlgmr.msra.gmra.mrb[48].mxu0 %v10476_v17 }
 0x495   :  { %9292 = vmatprep.mubr.msk.f32.mxu0 %vm9759_vm1, %v9758_v30 }
 0x498   :  { %9283 = vmatmul.mubr.f32.vlgmr.msra.gmra.mrb[58].mxu1 %v6699_v25 }
 0x499   :  { %9286 = vmatpush3.msra.mxu1 %v6634_v36  ;;  %9287 = vmatprep.mubr.msk.f32.mxu1 %vm9759_vm1, %v9758_v30 }
 0x49a   :  { %9320 = vmatprep.subr.mxu1 %v9758_v30 }
 0x4a0   :  { %9288 = vmatmul.mubr.f32.vlgmr.msra.gmra.mrb[58].mxu1 %v6699_v25 }
 0x4a1   :  { %9322 = vmatprep.mubr.msk.f32.mxu1 %vm9759_vm1, %v9758_v30 }
 0x4b9   :  { %v4315_v34 = vpop.xlane.xlu1 %4314 }
 0x4ba   :  { %9642 = vrcp.f32 %v4315_v34  ;;  %vm4325_vm14 = vcmp.gt.f32.partialorder %v4315_v34, 0.0 }
 0x4bd   :  { %v7080_v38 = vpop.permute.xlu1 %7079 }
 0x4be   :  { %v10530_v39 = vand.u32 4294901760, %v7080_v38 }
 0x4c0   :  { %9291 = vmatpush3.msra.mxu0 %v10530_v39  ;;  %v7163_v45 = vsub.f32 %v7080_v38, %v10530_v39  ;;  %v8000_v38 = vld [vmem:[#allocation9 + $0x10] sm:$0xff] }
 0x4c1   :  { %9295 = vmatprep.subr.mxu0 %v9758_v30 }
 0x4c2   :  { %v7164_v48 = vand.u32 4294901760, %v7163_v45 }
 0x4c4   :  { %v9643_v26 = vpop.eup %9642  ;;  %v7165_v56 = vsub.f32 %v7163_v45, %v7164_v48 }
 0x4c5   :  { %v4341_v41 = vsel %vm4325_vm14, %v9643_v26, 0.0  ;;  %v4318_v42 = vpop.xlane.xlu0 %4317  ;;  %v8023_v26 = vand.u32 4294901760, %v8000_v38 }
 0x4c6   :  { %v4349_v18 = vmul.f32 %v4341_v41, %v10392_v60  ;;  %9644 = vrcp.f32 %v4318_v42  ;;  %vm4326_vm15 = vcmp.gt.f32.partialorder %v4318_v42, 0.0  ;;  %v7166_v43 = vand.u32 4294901760, %v7165_v56 }
 0x4c8   :  { %v7083_v40 = vsel %vm594_vm2, %v4349_v18, 0  ;;  %v8107_v18 = vsub.f32 %v7998_v46, %v8017_v53 }
 0x4c9   :  { %v7151_v54 = vand.u32 4294901760, %v7083_v40  ;;  %v7532_v47 = vpop.permute.xlu0 %7531 }
 0x4ca   :  { %v7538_v51 = vand.u32 4294901760, %v7532_v47 }
 0x4cb   :  { %v7152_v52 = vsub.f32 %v7083_v40, %v7151_v54  ;;  %v8108_v40 = vand.u32 4294901760, %v8107_v18 }
 0x4cc   :  { %9321 = vmatpush3.msra.mxu1 %v7538_v51  ;;  %v7615_v28 = vsub.f32 %v7532_v47, %v7538_v51 }
 0x4cd   :  { %v7153_v55 = vand.u32 4294901760, %v7152_v52  ;;  %9325 = vmatprep.subr.mxu1 %v9758_v30 }
 0x4ce   :  { %v7616_v2 = vand.u32 4294901760, %v7615_v28 }
 0x4cf   :  { %v7154_v59 = vsub.f32 %v7152_v52, %v7153_v55 }
 0x4d0   :  { %v9645_v61 = vpop.eup %9644  ;;  %v7617_v5 = vsub.f32 %v7615_v28, %v7616_v2 }
 0x4d1   :  { %v4342_v62 = vsel %vm4326_vm15, %v9645_v61, 0.0  ;;  %v7155_v60 = vand.u32 4294901760, %v7154_v59 }
 0x4d2   :  { %v4350_v63 = vmul.f32 %v4342_v62, %v10419_v50  ;;  %v7618_v8 = vand.u32 4294901760, %v7617_v5 }
 0x4d3   :  { %9293 = vmatmul.mubr.f32.vlgmr.msra.gmra.mrb[50].mxu0 %v7155_v60 }
 0x4d4   :  { %v7535_v0 = vsel %vm594_vm2, %v4350_v63, 0  ;;  %9296 = vmatpush3.msra.mxu0 %v7166_v43  ;;  %9297 = vmatprep.mubr.msk.f32.mxu0 %vm9759_vm1, %v9758_v30 }
 0x4d5   :  { %v7603_v1 = vand.u32 4294901760, %v7535_v0  ;;  %9300 = vmatprep.subr.mxu0 %v9758_v30 }
 0x4d7   :  { %v7604_v3 = vsub.f32 %v7535_v0, %v7603_v1 }
 0x4d9   :  { %v7605_v4 = vand.u32 4294901760, %v7604_v3 }
 0x4db   :  { %9298 = vmatmul.mubr.f32.vlgmr.msra.gmra.mrb[50].mxu0 %v7151_v54  ;;  %v7606_v6 = vsub.f32 %v7604_v3, %v7605_v4 }
 0x4dc   :  { %9301 = vmatpush3.msra.mxu0 %v7163_v45  ;;  %9302 = vmatprep.mubr.msk.f32.mxu0 %vm9759_vm1, %v9758_v30  ;;  %v8114_v45 = vsub.f32 %v7999_v27, %v8020_v29 }
 0x4dd   :  { %v7607_v50 = vand.u32 4294901760, %v7606_v6  ;;  %9305 = vmatprep.subr.mxu0 %v9758_v30 }
 0x4df   :  { %9323 = vmatmul.mubr.f32.vlgmr.msra.gmra.mrb[60].mxu1 %v7607_v50 }
 0x4e0   :  { %9326 = vmatpush3.msra.mxu1 %v7618_v8  ;;  %9327 = vmatprep.mubr.msk.f32.mxu1 %vm9759_vm1, %v9758_v30 }
 0x4e1   :  { %9330 = vmatprep.subr.mxu1 %v9758_v30 }
 0x4e3   :  { %9303 = vmatmul.mubr.f32.vlgmr.msra.gmra.mrb[50].mxu0 %v7152_v52  ;;  %v8121_v52 = vsub.f32 %v8000_v38, %v8023_v26 }
 0x4e4   :  { %9306 = vmatpush3.msra.mxu0 %v10530_v39  ;;  %9307 = vmatprep.mubr.msk.f32.mxu0 %vm9759_vm1, %v9758_v30 }
 0x4e5   :  { %9310 = vmatprep.subr.mxu0 %v9758_v30  ;;  %v8122_v61 = vand.u32 4294901760, %v8121_v52 }
 0x4e7   :  { %9328 = vmatmul.mubr.f32.vlgmr.msra.gmra.mrb[60].mxu1 %v7603_v1  ;;  %v8123_v43 = vsub.f32 %v8121_v52, %v8122_v61 }
 0x4e8   :  { %9331 = vmatpush3.msra.mxu1 %v7615_v28  ;;  %9332 = vmatprep.mubr.msk.f32.mxu1 %vm9759_vm1, %v9758_v30 }
 0x4e9   :  { %9335 = vmatprep.subr.mxu1 %v9758_v30 }
 0x4eb   :  { %9308 = vmatmul.mubr.f32.vlgmr.msra.gmra.mrb[50].mxu0 %v7153_v55 }
 0x4ec   :  { %9311 = vmatpush3.msra.mxu0 %v7164_v48  ;;  %9312 = vmatprep.mubr.msk.f32.mxu0 %vm9759_vm1, %v9758_v30  ;;  %v8109_v48 = vsub.f32 %v8107_v18, %v8108_v40 }
 0x4ed   :  { %9315 = vmatprep.subr.mxu0 %v9758_v30 }
 0x4ee   :  { %v8110_v56 = vand.u32 4294901760, %v8109_v48 }
 0x4ef   :  { %9333 = vmatmul.mubr.f32.vlgmr.msra.gmra.mrb[60].mxu1 %v7604_v3 }
 0x4f0   :  { %9336 = vmatpush3.msra.mxu1 %v7538_v51  ;;  %9337 = vmatprep.mubr.msk.f32.mxu1 %vm9759_vm1, %v9758_v30 }
 0x4f1   :  { %9340 = vmatprep.subr.mxu1 %v9758_v30 }
 0x4f3   :  { %9313 = vmatmul.mubr.f32.vlgmr.msra.gmra.mrb[50].mxu0 %v7151_v54 }
 0x4f4   :  { %9316 = vmatpush3.msra.mxu0 %v10530_v39  ;;  %9317 = vmatprep.mubr.msk.f32.mxu0 %vm9759_vm1, %v9758_v30  ;;  %v8001_v39 = vld [vmem:[#allocation9 + $0x18] sm:$0xff] }
 0x4f5   :  { %9465 = vmatprep.subr.bf16.mxu0 %v10587_v33  ;;  %v8026_v41 = vand.u32 4294901760, %v8001_v39 }
 0x4f7   :  { %9338 = vmatmul.mubr.f32.vlgmr.msra.gmra.mrb[60].mxu1 %v7605_v4  ;;  %v10594_v42 = vpack.c.bf16 %v8026_v41, %v8023_v26  ;;  %v8128_v55 = vsub.f32 %v8001_v39, %v8026_v41  ;;  %v9456_v4 = vpack.c.bf16 %v8114_v45, %v8107_v18 }
 0x4f8   :  { %9341 = vmatpush3.msra.mxu1 %v7616_v2  ;;  %9342 = vmatprep.mubr.msk.f32.mxu1 %vm9759_vm1, %v9758_v30 }
 0x4f9   :  { %v4799_v9 = vpop.f32.mrb[44].mxu0  ;;  %9345 = vmatprep.subr.mxu1 %v9758_v30  ;;  %v9460_v5 = vpack.c.bf16 %v8128_v55, %v8121_v52 }
 0x4fa   :  { %v9139_v10 = vpop.f32.mrb[45].mxu0 }
 0x4fb   :  { %9318 = vmatmul.mubr.f32.vlgmr.msra.gmra.mrb[50].mxu0 %v7151_v54  ;;  %v8115_v54 = vand.u32 4294901760, %v8114_v45 }
 0x4fc   :  { %9467 = vmatpush3.bf16.msra.mxu0 %v10587_v33 }
 0x4fd   :  { %9469 = vmatprep.subr.bf16.mxu0 %v10594_v42  ;;  %v9472_v47 = vpack.c.bf16 %v8115_v54, %v8108_v40 }
 0x4ff   :  { %9343 = vmatmul.mubr.f32.vlgmr.msra.gmra.mrb[60].mxu1 %v7603_v1 }
 0x500   :  { %9346 = vmatpush3.msra.mxu1 %v7538_v51  ;;  %9347 = vmatprep.mubr.msk.f32.mxu1 %vm9759_vm1, %v9758_v30  ;;  %vm6173_vm1 = vcmask 195584   ;;  %v8116_v51 = vsub.f32 %v8114_v45, %v8115_v54 }
 0x501   :  { %9441 = vmatprep.subr.bf16.mxu1 %v10587_v33  ;;  %9471 = vmatpush3.bf16.msra.mxu0 %v10594_v42 }
 0x502   :  { %9473 = vmatprep.subr.bf16.mxu0 %v9472_v47  ;;  %v8117_v59 = vand.u32 4294901760, %v8116_v51 }
 0x504   :  { %v9448_v60 = vpack.c.bf16 %v8117_v59, %v8110_v56 }
 0x505   :  { %v5251_v11 = vpop.f32.mrb[54].mxu1 }
 0x506   :  { %6160 = vrot.lane.b32.xlu1 %v5251_v11, %s9756_s15  ;;  %v9169_v12 = vpop.f32.mrb[55].mxu1 }
 0x507   :  { %9348 = vmatmul.mubr.f32.vlgmr.msra.gmra.mrb[60].mxu1 %v7603_v1  ;;  %v8124_v1 = vand.u32 4294901760, %v8123_v43 }
 0x508   :  { %9443 = vmatpush3.bf16.msra.mxu1 %v10587_v33 }
 0x509   :  { %9445 = vmatprep.subr.bf16.mxu1 %v10594_v42 }
 0x50c   :  { %9447 = vmatpush3.bf16.msra.mxu1 %v10594_v42 }
 0x50d   :  { %9449 = vmatprep.subr.bf16.mxu1 %v9448_v60 }
 0x533   :  { %v5703_v15 = vpop.f32.mrb[46].mxu0 }
 0x534   :  { %v9199_v16 = vpop.f32.mrb[47].mxu0  ;;  %6164 = vrot.lane.b32.xlu1 %v5703_v15, %s9772_s2 }
 0x53f   :  { %v6155_v17 = vpop.f32.mrb[56].mxu1 }
 0x540   :  { %6168 = vrot.lane.b32.xlu1 %v6155_v17, %s9773_s26  ;;  %v9229_v19 = vpop.f32.mrb[57].mxu1 }
 0x567   :  { %v10573_v14 = vpop.f32.mrb[48].mxu0 }
 0x568   :  { %v9259_v44 = vpop.f32.mrb[49].mxu0 }
 0x573   :  { %v7075_v20 = vpop.f32.mrb[58].mxu1 }
 0x574   :  { %7984 = vrot.lane.b32.xlu0 %v7075_v20, %s9756_s15  ;;  %v9289_v30 = vpop.f32.mrb[59].mxu1  ;;  %v8575_v20 = vld [vmem:[%s10640_s4] ss:$0 sm:$0xff] }
 0x578   :  { %v6161_v58 = vpop.permute.xlu1 %6160 }
 0x579   :  { %v6171_v49 = vsel %vm594_vm2, %v4799_v9, %v6161_v58 }
 0x5a6   :  { %v6165_v36 = vpop.permute.xlu1 %6164 }
 0x5a7   :  { %v6172_v13 = vsel %vm68_vm0, %v6171_v49, %v6165_v36 }
 0x5b2   :  { %v6169_v37 = vpop.permute.xlu1 %6168 }
 0x5b3   :  { %v6174_v21 = vsel %vm6173_vm1, %v6172_v13, %v6169_v37 }
 0x5b4   :  { %v8011_v57 = vsel %vm8009_vm3, %v6174_v21, 0 }
 0x5b5   :  { %v10580_v22 = vand.u32 4294901760, %v8011_v57 }
 0x5b7   :  { %v10583_v23 = vsub.f32 %v8011_v57, %v10580_v22 }
 0x5b9   :  { %v8087_v24 = vand.u32 4294901760, %v10583_v23 }
 0x5bb   :  { %9391 = vmatprep.mubr.f32.mxu0 %v8087_v24  ;;  %v8088_v25 = vsub.f32 %v10583_v23, %v8087_v24 }
 0x5bd   :  { %v8089_v35 = vand.u32 4294901760, %v8088_v25 }
 0x5bf   :  { %9358 = vmatprep.mubr.f32.mxu1 %v8089_v35 }
 0x5ce   :  { %v7527_v7 = vpop.f32.mrb[50].mxu0 }
 0x5cf   :  { %v9319_v34 = vpop.f32.mrb[51].mxu0  ;;  %7988 = vrot.lane.b32.xlu0 %v7527_v7, %s9772_s2 }
 0x5d3   :  { %8544 = vrot.lane.b32.xlu0 %v9880_v32, %s9774_s27  ;;  %v8129_v32 = vand.u32 4294901760, %v8128_v55 }
 0x5d5   :  { %v9476_v28 = vpack.c.bf16 %v8129_v32, %v8122_v61  ;;  %v8130_v0 = vsub.f32 %v8128_v55, %v8129_v32 }
 0x5d7   :  { %v8131_v2 = vand.u32 4294901760, %v8130_v0 }
 0x5d9   :  { %v9452_v3 = vpack.c.bf16 %v8131_v2, %v8124_v1 }
 0x5da   :  { %v7979_v62 = vpop.f32.mrb[60].mxu1 }
 0x5db   :  { %7992 = vrot.lane.b32.xlu1 %v7979_v62, %s9773_s26  ;;  %v9349_v63 = vpop.f32.mrb[61].mxu1 }
 0x5df   :  { %8546 = vrot.lane.b32.xlu1 %v9878_v31, %s9774_s27 }
 0x5e6   :  { %v7985_v6 = vpop.permute.xlu0 %7984 }
 0x5e7   :  { %v7995_v8 = vsel %vm594_vm2, %v10573_v14, %v7985_v6 }
 0x641   :  { %v7989_v50 = vpop.permute.xlu0 %7988 }
 0x642   :  { %v7996_v9 = vsel %vm68_vm0, %v7995_v8, %v7989_v50 }
 0x645   :  { %v8545_v57 = vpop.permute.xlu0 %8544 }
 0x64d   :  { %v7993_v10 = vpop.permute.xlu1 %7992 }
 0x64e   :  { %v7997_v11 = vsel %vm6173_vm1, %v7996_v9, %v7993_v10 }
 0x64f   :  { %v8014_v12 = vsel %vm8009_vm3, %v7997_v11, 0 }
 0x650   :  { %v8095_v15 = vand.u32 4294901760, %v8014_v12 }
 0x651   :  { %v8547_v37 = vpop.permute.xlu1 %8546 }
 0x652   :  { %v8096_v16 = vsub.f32 %v8014_v12, %v8095_v15 }
 0x654   :  { %v8097_v17 = vand.u32 4294901760, %v8096_v16 }
 0x656   :  { %9392 = vmatmul.mubr.f32.vlgmr.msra.gmra.mrb[52].mxu0 %v8097_v17  ;;  %v8098_v31 = vsub.f32 %v8096_v16, %v8097_v17 }
 0x657   :  { %9475 = vmatpush3.bf16.msra.mxu0 %v9472_v47  ;;  %9402 = vmatprep.mubr.f32.mxu0 %v10580_v22 }
 0x658   :  { %v8099_v19 = vand.u32 4294901760, %v8098_v31  ;;  %9477 = vmatprep.subr.bf16.mxu0 %v9476_v28 }
 0x65a   :  { %9359 = vmatmul.mubr.f32.vlgmr.msra.gmra.mrb[62].mxu1 %v8099_v19 }
 0x65b   :  { %9451 = vmatpush3.bf16.msra.mxu1 %v9448_v60  ;;  %9369 = vmatprep.mubr.f32.mxu1 %v10580_v22 }
 0x65c   :  { %9479 = vmatpush3.bf16.msra.mxu0 %v9476_v28  ;;  %9453 = vmatprep.subr.bf16.mxu1 %v9452_v3 }
 0x65d   :  { %9481 = vmatprep.subr.bf16.mxu0 %v10587_v33 }
 0x65f   :  { %9403 = vmatmul.mubr.f32.vlgmr.msra.gmra.mrb[52].mxu0 %v8095_v15  ;;  %9455 = vmatpush3.bf16.msra.mxu1 %v9452_v3 }
 0x660   :  { %9483 = vmatpush3.bf16.msra.mxu0 %v10587_v33  ;;  %9413 = vmatprep.mubr.f32.mxu0 %v10580_v22 }
 0x661   :  { %9457 = vmatprep.subr.bf16.mxu1 %v9456_v4  ;;  %9485 = vmatprep.subr.bf16.mxu0 %v10594_v42 }
 0x662   :  { %9370 = vmatmul.mubr.f32.vlgmr.msra.gmra.mrb[62].mxu1 %v8095_v15 }
 0x663   :  { %9459 = vmatpush3.bf16.msra.mxu1 %v9456_v4  ;;  %9380 = vmatprep.mubr.f32.mxu1 %v10583_v23 }
 0x664   :  { %9487 = vmatpush3.bf16.msra.mxu0 %v10594_v42  ;;  %9461 = vmatprep.subr.bf16.mxu1 %v9460_v5 }
 0x667   :  { %9414 = vmatmul.mubr.f32.vlgmr.msra.gmra.mrb[52].mxu0 %v8095_v15  ;;  %9463 = vmatpush3.bf16.msra.mxu1 %v9460_v5 }
 0x66a   :  { %9381 = vmatmul.mubr.f32.vlgmr.msra.gmra.mrb[62].mxu1 %v8096_v16 }
 0x73a   :  { %v9415_v14 = vpop.f32.mrb[52].mxu0 }
 0x73b   :  { %v8534_v44 = vpop.f32.mrb[53].mxu0 }
 0x73d   :  { %v9382_v30 = vpop.f32.mrb[62].mxu1 }
 0x73e   :  { %v9488_v58 = vadd.f32 %v9382_v30, %v8575_v20  ;;  %v8278_v36 = vpop.f32.mrb[63].mxu1 }
 0x73f   :  { %v9490_v49 = vadd.f32 %v8575_v20, %v8278_v36 }
 0x740   :  { %v9489_v13 = vadd.f32 %v9488_v58, %v9415_v14 }
 0x741   :  { %v9491_v21 = vadd.f32 %v9490_v49, %v8534_v44 }
 0x742   :  { %v8551_v22 = vsel %vm8009_vm3, %v9489_v13, %v8547_v37 }
 0x743   :  { %v8550_v23 = vsel %vm8009_vm3, %v9491_v21, %v8545_v57  ;;  %8553 = vst [vmem:[#allocation10 + $0x8] sm:$0xff] %v8551_v22 }
 0x744   :  { %8552 = vst [vmem:[#allocation10] sm:$0xff] %v8550_v23 }
 0x745   :  { %9733 = shalt.err (!%p9730_p3)
}
 0x746   :  { %s9734_s10 = scalar_lea.hbm %s10641_s5, 256 }
 0x747   :  { %p9735_p4 = scmp.ne.s32.totalorder %s10641_s5, %s9734_s10  ;;  %p9738_p5 = scmp.lt.u32.totalorder %s9734_s10, %s10641_s5 }
 0x749   :  { %p9740_p6 = pnand %p9738_p5, %p9735_p4 }
 0x74b   :  { %9743 = shalt.err (!%p9740_p6)
}
 0x74c   :  { %8565 = dma.vmem_to_hbm [thread:$0]  %s8560_s7, 256, %s10641_s5, [#allocation6], %s9755_s14, %s9755_s14, %s9756_s15  }
 0x74d   :  { %9750 = dma.done.wait [#allocation6], 256  }
 0x74e   :  { %9751 = vsyncadd [#allocation6], 4294967040 }
 0x74f   :  { %8569 = vsyncpa [#allocation5], 1 }
 0x750   :  { %8570 = vsyncpa [#allocation8], 1 }
 0x751   :  { %8571 = vsyncpa [#allocation6], 1 }

</bundles_post_ra>
